<compile_context>
chip_gen: v6e
topology: v6e:2x2x1
jax: 0.10.0
libtpu: 0.0.40
codegen_flags: <defaults>
</compile_context>

<pallas_src>
from functools import partial

import jax
import jax.numpy as jnp
from jax.experimental import pallas as pl
from jax.experimental.pallas import tpu as pltpu


def _layernorm(x, gamma, beta, eps=1e-5):
    mean = jnp.mean(x, axis=-1, keepdims=True)
    var = jnp.mean(jnp.square(x - mean), axis=-1, keepdims=True)
    return (x - mean) * jax.lax.rsqrt(var + eps) * gamma + beta


def _dot01_exact(a, sel01):
    """a @ sel01 for an exact {0,1} selection matrix.

    Splits `a` into bf16 hi/lo parts so the product stays ~f32-accurate no matter how
    the MXU handles f32 operands (sel01 entries are exact in bf16).  Keeps the segmented
    softmax sums / diagonal selection within the 1e-5 attention-map tolerance while
    still running on the (otherwise idle) MXU instead of XLU reductions + VPU selects.
    """
    a_hi = a.astype(jnp.bfloat16).astype(jnp.float32)
    a_lo = a - a_hi
    return (jnp.dot(a_hi, sel01, preferred_element_type=jnp.float32)
            + jnp.dot(a_lo, sel01, preferred_element_type=jnp.float32))


def transformer_block_kernel(
    x_ref, wqkv_ref, wproj_ref, bproj_ref,
    g1_ref, b1_ref, g2_ref, b2_ref,
    wff1_ref, bff1_ref, wff2_ref, bff2_ref,
    qmask_ref, causal_ref, diag_ref, segsum_ref, headsel_ref,
    out_ref, wmaps_ref,
    *, num_heads, qkv_stride):
    bb, T, C = x_ref.shape            # bb = batches handled by this grid step
    H = num_heads
    S = qkv_stride                    # lane-tile-aligned stride of q/k/v inside wqkv

    x = x_ref[...].reshape(bb * T, C)                 # fold batch into the matmul M dim

    # --- LayerNorm 1 (row-wise, batch-folded) ---
    ln1 = _layernorm(x, g1_ref[...], b1_ref[...])

    # --- fused QKV projection; q/k/v start at lane offsets 0, S, 2S (tile-aligned) ---
    qkv = jnp.dot(ln1, wqkv_ref[...], preferred_element_type=jnp.float32)   # (bb*T, 3S)
    q = qkv[:, 0:C].reshape(bb, T, C)
    k = qkv[:, S:S + C].reshape(bb, T, C)
    v = qkv[:, 2 * S:2 * S + C]                        # stays batch-folded (bb*T, C)

    # --- all-head logits: query-major operand (sublane tile of q, no transpose), one
    #     batched MXU contraction over C.  Slab columns are ordered h*T + query_j. ---
    qm = jnp.concatenate([q] * H, axis=1) * qmask_ref[...]          # (bb, H*T, C)
    logits = jnp.einsum('bic,bjc->bij', k, qm,
                        preferred_element_type=jnp.float32)         # (bb, T(key), H*T)
    logits = logits + causal_ref[...]                               # 0 / -inf causal bias

    # --- per-head-segment softmax on the lane-dense slab (shared per-row shift is
    #     exact for per-segment softmax; the diagonal is never masked, so every
    #     segment keeps at least one finite entry) ---
    m = jnp.max(logits, axis=-1, keepdims=True)
    e = jnp.exp(logits - m)
    sums = _dot01_exact(e.reshape(bb * T, H * T), segsum_ref[...])  # per-segment sums,
    inv = pl.reciprocal(sums, approx=False).reshape(bb, T, H * T)   # broadcast in place
    w = e * inv
    wmaps_ref[...] = w                                              # lane-dense 128-wide store

    # --- torch.einsum('btt,btc->btc', W, V): diagonal-only scaling.  Pick each head's
    #     diagonal weight and spread it across that head's channels with one MXU select. ---
    wd = (w * diag_ref[...]).reshape(bb * T, H * T)
    scale = _dot01_exact(wd, headsel_ref[...])                      # (bb*T, C)
    attn = scale * v

    # --- output projection + residual ---
    x1 = x + jnp.dot(attn, wproj_ref[...], preferred_element_type=jnp.float32) + bproj_ref[...]

    # --- LayerNorm 2 + FeedForward + residual ---
    ln2 = _layernorm(x1, g2_ref[...], b2_ref[...])
    h1 = jnp.maximum(
        jnp.dot(ln2, wff1_ref[...], preferred_element_type=jnp.float32) + bff1_ref[...], 0.0)
    ff = jnp.dot(h1, wff2_ref[...], preferred_element_type=jnp.float32) + bff2_ref[...]
    out_ref[...] = (x1 + ff).astype(out_ref.dtype).reshape(bb, T, C)


def _tensorcores_per_device():
    """v5e/v6e (and per-core v2/v3 devices) expose 1 TensorCore per JAX device;
    v4/v5p (megacore) and v7x expose 2."""
    try:
        kind = jax.devices()[0].device_kind.lower()
    except Exception:
        return 1
    single_tc = ("v2", "v3", "v5e", "v5 lite", "v5lite", "v6e", "v6 lite", "v6lite")
    return 1 if any(tag in kind for tag in single_tc) else 2


def transformer_block(x, params, num_heads, autoregression=True, batch_block=None):
    B, T, C = x.shape
    H = num_heads
    hd = C // H
    hidden = params["wff1"].shape[1]

    # One big grid step per TensorCore: bb = B on single-TC chips, B // n_tc on
    # dual-TC chips (v7x / v4 / v5p), grid stays "parallel" over the remaining steps.
    if batch_block is None:
        n_tc = _tensorcores_per_device()
        if n_tc > 1 and B % n_tc == 0:
            batch_block = B // n_tc
        else:
            batch_block = B
    if B % batch_block != 0:
        batch_block = 1
    nblocks = B // batch_block

    # --- fused, lane-tile-aligned QKV weight: q/k/v each start at a multiple of 128 ---
    qkv_stride = ((C + 127) // 128) * 128
    wqkv = jnp.zeros((C, 3 * qkv_stride), jnp.float32)
    wqkv = wqkv.at[:, 0:C].set(params["wq"])
    wqkv = wqkv.at[:, qkv_stride:qkv_stride + C].set(params["wk"])
    wqkv = wqkv.at[:, 2 * qkv_stride:2 * qkv_stride + C].set(params["wv"])

    # --- constants: built once here, passed as resident VMEM inputs (never rebuilt
    #     inside the kernel).  Slab columns are ordered h*T + query_j. ---
    key_i = jnp.arange(T)                          # key (row) index
    col = jnp.arange(H * T)
    col_q = col % T                                # query index inside each head segment
    col_h = col // T                               # head owning each slab column
    ch_h = jnp.arange(C) // hd                     # head owning each embed channel

    # qmask: block-diagonal head mask * 1/sqrt(C)  (module quirk: scaled by embed_dim)
    qmask = (col_h[:, None] == ch_h[None, :]).astype(jnp.float32) * (C ** -0.5)   # (H*T, C)
    if autoregression:
        causal = jnp.where(col_q[None, :] > key_i[:, None],
                           -jnp.inf, 0.0).astype(jnp.float32)                     # (T, H*T)
    else:
        causal = jnp.zeros((T, H * T), jnp.float32)
    diag = (col_q[None, :] == key_i[:, None]).astype(jnp.float32)                 # (T, H*T)
    segsum = (col_h[:, None] == col_h[None, :]).astype(jnp.float32)               # (H*T, H*T)
    headsel = (col_h[:, None] == ch_h[None, :]).astype(jnp.float32)               # (H*T, C)

    kernel = partial(transformer_block_kernel, num_heads=H, qkv_stride=qkv_stride)

    def wspec(arr):
        return pl.BlockSpec(arr.shape, lambda g: (0, 0))

    in_specs = [
        pl.BlockSpec((batch_block, T, C), lambda g: (g, 0, 0)),   # x
        wspec(wqkv),                                              # fused Wqkv^T (padded)
        wspec(params["wproj"]), wspec(params["bproj"]),           # Wproj^T, bproj
        wspec(params["g1"]), wspec(params["b1"]),                 # ln1 gamma, beta
        wspec(params["g2"]), wspec(params["b2"]),                 # ln2 gamma, beta
        wspec(params["wff1"]), wspec(params["bff1"]),             # FF W1^T, b1
        wspec(params["wff2"]), wspec(params["bff2"]),             # FF W2^T, b2
        wspec(qmask), wspec(causal), wspec(diag), wspec(segsum), wspec(headsel),
    ]
    out_shapes = (
        jax.ShapeDtypeStruct((B, T, C), x.dtype),
        jax.ShapeDtypeStruct((B, T, H * T), jnp.float32),         # lane-dense weight slab
    )
    out_specs = (
        pl.BlockSpec((batch_block, T, C), lambda g: (g, 0, 0)),
        pl.BlockSpec((batch_block, T, H * T), lambda g: (g, 0, 0)),
    )

    out, wmaps_slab = pl.pallas_call(
        kernel,
        out_shape=out_shapes,
        grid=(nblocks,),
        in_specs=in_specs,
        out_specs=out_specs,
        compiler_params=pltpu.CompilerParams(dimension_semantics=("parallel",)),
    )(x, wqkv, params["wproj"], params["bproj"],
      params["g1"], params["b1"], params["g2"], params["b2"],
      params["wff1"], params["bff1"], params["wff2"], params["bff2"],
      qmask, causal, diag, segsum, headsel)

    # slab[b, i, h*T + j] == softmax_weights[h][b, key=i, query=j]
    wmaps4 = wmaps_slab.reshape(B, T, H, T)
    attention_maps = [wmaps4[:, :, h, :] for h in range(H)]
    return out, attention_maps


def reference(x, params, num_heads):
    """Pure-JAX reference mirroring the PyTorch forward exactly."""
    B, T, C = x.shape
    hd = C // num_heads

    def ln(v, g, b):
        m = v.mean(-1, keepdims=True)
        var = ((v - m) ** 2).mean(-1, keepdims=True)
        return (v - m) / jnp.sqrt(var + 1e-5) * g + b

    ln1 = ln(x, params["g1"][0], params["b1"][0])
    q = ln1 @ params["wq"]
    k = ln1 @ params["wk"]
    v = ln1 @ params["wv"]
    tril = jnp.tril(jnp.ones((T, T), jnp.float32))
    attns, maps = [], []
    for h in range(num_heads):
        sl = slice(h * hd, (h + 1) * hd)
        qh, kh, vh = q[..., sl], k[..., sl], v[..., sl]
        logits = jnp.einsum("btc,bTc->bTt", qh, kh) / (C ** 0.5)
        logits = jnp.where(tril == 0, -jnp.inf, logits)
        w = jax.nn.softmax(logits, axis=-1)
        maps.append(w)
        diag = jnp.diagonal(w, axis1=1, axis2=2)[..., None]
        attns.append(diag * vh)
    attn = jnp.concatenate(attns, -1)
    x1 = x + attn @ params["wproj"] + params["bproj"][0]
    ln2 = ln(x1, params["g2"][0], params["b2"][0])
    ff = jnp.maximum(ln2 @ params["wff1"] + params["bff1"][0], 0.0) @ params["wff2"] + params["bff2"][0]
    return x1 + ff, maps


def init_params(key, embed_dim, hidden_dim):
    ks = jax.random.split(key, 10)
    s = 0.1
    return {
        "wq": jax.random.normal(ks[0], (embed_dim, embed_dim), jnp.float32) * s,  # pre-transposed
        "wk": jax.random.normal(ks[1], (embed_dim, embed_dim), jnp.float32) * s,
        "wv": jax.random.normal(ks[2], (embed_dim, embed_dim), jnp.float32) * s,
        "wproj": jax.random.normal(ks[3], (embed_dim, embed_dim), jnp.float32) * s,
        "bproj": jax.random.normal(ks[4], (1, embed_dim), jnp.float32) * s,
        "g1": jnp.ones((1, embed_dim), jnp.float32),
        "b1": jnp.zeros((1, embed_dim), jnp.float32),
        "g2": jnp.ones((1, embed_dim), jnp.float32),
        "b2": jnp.zeros((1, embed_dim), jnp.float32),
        "wff1": jax.random.normal(ks[5], (embed_dim, hidden_dim), jnp.float32) * s,
        "bff1": jax.random.normal(ks[6], (1, hidden_dim), jnp.float32) * s,
        "wff2": jax.random.normal(ks[7], (hidden_dim, embed_dim), jnp.float32) * s,
        "bff2": jax.random.normal(ks[8], (1, embed_dim), jnp.float32) * s,
    }


if __name__ == "__main__":
    B = 2
    block_size = 32           # T (module asserts T == block_size)
    embed_dim = 32
    num_heads = 4
    hidden_dim = 64

    key = jax.random.PRNGKey(0)
    kx, kp = jax.random.split(key)
    x = jax.random.normal(kx, (B, block_size, embed_dim), jnp.float32)
    params = init_params(kp, embed_dim, hidden_dim)

    out, attn_maps = transformer_block(x, params, num_heads, autoregression=True)
    out = jax.block_until_ready(out)
    attn_maps = [jax.block_until_ready(m) for m in attn_maps]

    # sanity check against pure-JAX reference
    ref_out, ref_maps = reference(x, params, num_heads)
    assert jnp.allclose(out, ref_out, atol=1e-4, rtol=1e-4), "output mismatch"
    for got, want in zip(attn_maps, ref_maps):
        assert jnp.allclose(got, want, atol=1e-5, rtol=1e-5), "attention map mismatch"

    print("KERNEL_OK")
</pallas_src>

<mosaic_0001>
module attributes {stable_mosaic.version = 11 : i64} {
  func.func @transformer_block_kernel(%arg0: i32, %arg1: memref<1x32x32xf32, #tpu.memory_space<vmem>>, %arg2: memref<32x384xf32, #tpu.memory_space<vmem>>, %arg3: memref<32x32xf32, #tpu.memory_space<vmem>>, %arg4: memref<1x32xf32, #tpu.memory_space<vmem>>, %arg5: memref<1x32xf32, #tpu.memory_space<vmem>>, %arg6: memref<1x32xf32, #tpu.memory_space<vmem>>, %arg7: memref<1x32xf32, #tpu.memory_space<vmem>>, %arg8: memref<1x32xf32, #tpu.memory_space<vmem>>, %arg9: memref<32x64xf32, #tpu.memory_space<vmem>>, %arg10: memref<1x64xf32, #tpu.memory_space<vmem>>, %arg11: memref<64x32xf32, #tpu.memory_space<vmem>>, %arg12: memref<1x32xf32, #tpu.memory_space<vmem>>, %arg13: memref<128x32xf32, #tpu.memory_space<vmem>>, %arg14: memref<32x128xf32, #tpu.memory_space<vmem>>, %arg15: memref<32x128xf32, #tpu.memory_space<vmem>>, %arg16: memref<128x128xf32, #tpu.memory_space<vmem>>, %arg17: memref<128x32xf32, #tpu.memory_space<vmem>>, %arg18: memref<1x32x32xf32, #tpu.memory_space<vmem>>, %arg19: memref<1x32x128xf32, #tpu.memory_space<vmem>>) attributes {dimension_semantics = [#tpu.dimension_semantics<parallel>], iteration_bounds = array<i64: 2>, scalar_prefetch = 0 : i64, scratch_operands = 0 : i64, tpu.core_type = #tpu.core_type<tc>, window_params = [{transform_indices = @transform_0, window_bounds = array<i64: 1, 32, 32>}, {pipeline_mode = #tpu.pipeline_mode<synchronous>, transform_indices = @transform_1, window_bounds = array<i64: 32, 384>}, {pipeline_mode = #tpu.pipeline_mode<synchronous>, transform_indices = @transform_2, window_bounds = array<i64: 32, 32>}, {pipeline_mode = #tpu.pipeline_mode<synchronous>, transform_indices = @transform_3, window_bounds = array<i64: 1, 32>}, {pipeline_mode = #tpu.pipeline_mode<synchronous>, transform_indices = @transform_4, window_bounds = array<i64: 1, 32>}, {pipeline_mode = #tpu.pipeline_mode<synchronous>, transform_indices = @transform_5, window_bounds = array<i64: 1, 32>}, {pipeline_mode = #tpu.pipeline_mode<synchronous>, transform_indices = @transform_6, window_bounds = array<i64: 1, 32>}, {pipeline_mode = #tpu.pipeline_mode<synchronous>, transform_indices = @transform_7, window_bounds = array<i64: 1, 32>}, {pipeline_mode = #tpu.pipeline_mode<synchronous>, transform_indices = @transform_8, window_bounds = array<i64: 32, 64>}, {pipeline_mode = #tpu.pipeline_mode<synchronous>, transform_indices = @transform_9, window_bounds = array<i64: 1, 64>}, {pipeline_mode = #tpu.pipeline_mode<synchronous>, transform_indices = @transform_10, window_bounds = array<i64: 64, 32>}, {pipeline_mode = #tpu.pipeline_mode<synchronous>, transform_indices = @transform_11, window_bounds = array<i64: 1, 32>}, {pipeline_mode = #tpu.pipeline_mode<synchronous>, transform_indices = @transform_12, window_bounds = array<i64: 128, 32>}, {pipeline_mode = #tpu.pipeline_mode<synchronous>, transform_indices = @transform_13, window_bounds = array<i64: 32, 128>}, {pipeline_mode = #tpu.pipeline_mode<synchronous>, transform_indices = @transform_14, window_bounds = array<i64: 32, 128>}, {pipeline_mode = #tpu.pipeline_mode<synchronous>, transform_indices = @transform_15, window_bounds = array<i64: 128, 128>}, {pipeline_mode = #tpu.pipeline_mode<synchronous>, transform_indices = @transform_16, window_bounds = array<i64: 128, 32>}, {transform_indices = @transform_17, window_bounds = array<i64: 1, 32, 32>}, {transform_indices = @transform_18, window_bounds = array<i64: 1, 32, 128>}]} {
    %c0 = arith.constant 0 : index
    %c0_0 = arith.constant 0 : index
    %c0_1 = arith.constant 0 : index
    %0 = vector.load %arg1[%c0, %c0_0, %c0_1] : memref<1x32x32xf32, #tpu.memory_space<vmem>>, vector<1x32x32xf32>
    %1 = vector.shape_cast %0 : vector<1x32x32xf32> to vector<32x32xf32>
    %c0_2 = arith.constant 0 : index
    %c0_3 = arith.constant 0 : index
    %2 = vector.load %arg5[%c0_2, %c0_3] : memref<1x32xf32, #tpu.memory_space<vmem>>, vector<1x32xf32>
    %c0_4 = arith.constant 0 : index
    %c0_5 = arith.constant 0 : index
    %3 = vector.load %arg6[%c0_4, %c0_5] : memref<1x32xf32, #tpu.memory_space<vmem>>, vector<1x32xf32>
    %cst = arith.constant dense<0.000000e+00> : vector<32xf32>
    %4 = vector.multi_reduction <add>, %1, %cst [1] : vector<32x32xf32> to vector<32xf32>
    %5 = vector.shape_cast %4 : vector<32xf32> to vector<32x1xf32>
    %cst_6 = arith.constant 3.200000e+01 : f32
    %6 = vector.broadcast %cst_6 : f32 to vector<32x1xf32>
    %7 = arith.divf %5, %6 : vector<32x1xf32>
    %8 = vector.broadcast %7 : vector<32x1xf32> to vector<32x32xf32>
    %9 = arith.subf %1, %8 : vector<32x32xf32>
    %10 = arith.mulf %9, %9 : vector<32x32xf32>
    %cst_7 = arith.constant dense<0.000000e+00> : vector<32xf32>
    %11 = vector.multi_reduction <add>, %10, %cst_7 [1] : vector<32x32xf32> to vector<32xf32>
    %12 = vector.shape_cast %11 : vector<32xf32> to vector<32x1xf32>
    %cst_8 = arith.constant 3.200000e+01 : f32
    %13 = vector.broadcast %cst_8 : f32 to vector<32x1xf32>
    %14 = arith.divf %12, %13 : vector<32x1xf32>
    %15 = vector.broadcast %7 : vector<32x1xf32> to vector<32x32xf32>
    %16 = arith.subf %1, %15 : vector<32x32xf32>
    %cst_9 = arith.constant 9.99999974E-6 : f32
    %17 = vector.broadcast %cst_9 : f32 to vector<32x1xf32>
    %18 = arith.addf %14, %17 : vector<32x1xf32>
    %19 = math.rsqrt %18 : vector<32x1xf32>
    %20 = vector.broadcast %19 : vector<32x1xf32> to vector<32x32xf32>
    %21 = arith.mulf %16, %20 : vector<32x32xf32>
    %22 = vector.broadcast %2 : vector<1x32xf32> to vector<32x32xf32>
    %23 = arith.mulf %21, %22 : vector<32x32xf32>
    %24 = vector.broadcast %3 : vector<1x32xf32> to vector<32x32xf32>
    %25 = arith.addf %23, %24 : vector<32x32xf32>
    %c0_10 = arith.constant 0 : index
    %c0_11 = arith.constant 0 : index
    %26 = vector.load %arg2[%c0_10, %c0_11] : memref<32x384xf32, #tpu.memory_space<vmem>>, vector<32x384xf32>
    %cst_12 = arith.constant dense<0.000000e+00> : vector<32x384xf32>
    %27 = tpu.matmul %25, %26, %cst_12 {dimension_numbers = #tpu.dot_dimension_numbers<[1], [0], [0], [1], [0, 0, 1, 1], [], []>} : vector<32x32xf32>, vector<32x384xf32>, vector<32x384xf32> -> vector<32x384xf32>
    %28 = vector.extract_strided_slice %27 {offsets = [0, 0], sizes = [32, 32], strides = [1, 1]} : vector<32x384xf32> to vector<32x32xf32>
    %29 = vector.shape_cast %28 : vector<32x32xf32> to vector<1x32x32xf32>
    %30 = vector.extract_strided_slice %27 {offsets = [0, 128], sizes = [32, 32], strides = [1, 1]} : vector<32x384xf32> to vector<32x32xf32>
    %31 = vector.shape_cast %30 : vector<32x32xf32> to vector<1x32x32xf32>
    %32 = vector.extract_strided_slice %27 {offsets = [0, 256], sizes = [32, 32], strides = [1, 1]} : vector<32x384xf32> to vector<32x32xf32>
    %33 = tpu.concatenate %29, %29, %29, %29 in 1 : vector<1x32x32xf32>, vector<1x32x32xf32>, vector<1x32x32xf32>, vector<1x32x32xf32> -> vector<1x128x32xf32>
    %c0_13 = arith.constant 0 : index
    %c0_14 = arith.constant 0 : index
    %34 = vector.load %arg13[%c0_13, %c0_14] : memref<128x32xf32, #tpu.memory_space<vmem>>, vector<128x32xf32>
    %35 = vector.shape_cast %34 : vector<128x32xf32> to vector<1x128x32xf32>
    %36 = arith.mulf %33, %35 : vector<1x128x32xf32>
    "tpu.trace_start"() <{level = 10 : i32, message = "bic,bjc->bij"}> : () -> ()
    %cst_15 = arith.constant dense<0.000000e+00> : vector<1x32x128xf32>
    %37 = tpu.matmul %31, %36, %cst_15 {dimension_numbers = #tpu.dot_dimension_numbers<[2], [2], [1], [1], [0, 0, 0, 1, 1, 1], [0], [0]>} : vector<1x32x32xf32>, vector<1x128x32xf32>, vector<1x32x128xf32> -> vector<1x32x128xf32>
    "tpu.trace_stop"() : () -> ()
    %c0_16 = arith.constant 0 : index
    %c0_17 = arith.constant 0 : index
    %38 = vector.load %arg14[%c0_16, %c0_17] : memref<32x128xf32, #tpu.memory_space<vmem>>, vector<32x128xf32>
    %39 = vector.shape_cast %38 : vector<32x128xf32> to vector<1x32x128xf32>
    %40 = arith.addf %37, %39 : vector<1x32x128xf32>
    %cst_18 = arith.constant dense<0xFF800000> : vector<1x32xf32>
    %41 = vector.multi_reduction <maximumf>, %40, %cst_18 [2] : vector<1x32x128xf32> to vector<1x32xf32>
    %42 = vector.shape_cast %41 : vector<1x32xf32> to vector<1x32x1xf32>
    %43 = vector.broadcast %42 : vector<1x32x1xf32> to vector<1x32x128xf32>
    %44 = arith.subf %40, %43 : vector<1x32x128xf32>
    %45 = math.exp %44 : vector<1x32x128xf32>
    %46 = vector.shape_cast %45 : vector<1x32x128xf32> to vector<32x128xf32>
    %c0_19 = arith.constant 0 : index
    %c0_20 = arith.constant 0 : index
    %47 = vector.load %arg16[%c0_19, %c0_20] : memref<128x128xf32, #tpu.memory_space<vmem>>, vector<128x128xf32>
    %48 = arith.truncf %46 : vector<32x128xf32> to vector<32x128xbf16>
    %49 = arith.extf %48 : vector<32x128xbf16> to vector<32x128xf32>
    %50 = arith.subf %46, %49 : vector<32x128xf32>
    %cst_21 = arith.constant dense<0.000000e+00> : vector<32x128xf32>
    %51 = tpu.matmul %49, %47, %cst_21 {dimension_numbers = #tpu.dot_dimension_numbers<[1], [0], [0], [1], [0, 0, 1, 1], [], []>} : vector<32x128xf32>, vector<128x128xf32>, vector<32x128xf32> -> vector<32x128xf32>
    %cst_22 = arith.constant dense<0.000000e+00> : vector<32x128xf32>
    %52 = tpu.matmul %50, %47, %cst_22 {dimension_numbers = #tpu.dot_dimension_numbers<[1], [0], [0], [1], [0, 0, 1, 1], [], []>} : vector<32x128xf32>, vector<128x128xf32>, vector<32x128xf32> -> vector<32x128xf32>
    %53 = arith.addf %51, %52 : vector<32x128xf32>
    %54 = tpu.reciprocal %53 : vector<32x128xf32> -> vector<32x128xf32>
    %55 = vector.shape_cast %54 : vector<32x128xf32> to vector<1x32x128xf32>
    %56 = arith.mulf %45, %55 : vector<1x32x128xf32>
    %c0_23 = arith.constant 0 : index
    %c0_24 = arith.constant 0 : index
    %c0_25 = arith.constant 0 : index
    %57 = vector.load %arg19[%c0_23, %c0_24, %c0_25] : memref<1x32x128xf32, #tpu.memory_space<vmem>>, vector<1x32x128xf32>
    tpu.vector_store %arg19[%c0_23, %c0_24, %c0_25], %56 {strides = array<i32>} : memref<1x32x128xf32, #tpu.memory_space<vmem>>, vector<1x32x128xf32>,
    %c0_26 = arith.constant 0 : index
    %c0_27 = arith.constant 0 : index
    %58 = vector.load %arg15[%c0_26, %c0_27] : memref<32x128xf32, #tpu.memory_space<vmem>>, vector<32x128xf32>
    %59 = vector.shape_cast %58 : vector<32x128xf32> to vector<1x32x128xf32>
    %60 = arith.mulf %56, %59 : vector<1x32x128xf32>
    %61 = vector.shape_cast %60 : vector<1x32x128xf32> to vector<32x128xf32>
    %c0_28 = arith.constant 0 : index
    %c0_29 = arith.constant 0 : index
    %62 = vector.load %arg17[%c0_28, %c0_29] : memref<128x32xf32, #tpu.memory_space<vmem>>, vector<128x32xf32>
    %63 = arith.truncf %61 : vector<32x128xf32> to vector<32x128xbf16>
    %64 = arith.extf %63 : vector<32x128xbf16> to vector<32x128xf32>
    %65 = arith.subf %61, %64 : vector<32x128xf32>
    %cst_30 = arith.constant dense<0.000000e+00> : vector<32x32xf32>
    %66 = tpu.matmul %64, %62, %cst_30 {dimension_numbers = #tpu.dot_dimension_numbers<[1], [0], [0], [1], [0, 0, 1, 1], [], []>} : vector<32x128xf32>, vector<128x32xf32>, vector<32x32xf32> -> vector<32x32xf32>
    %cst_31 = arith.constant dense<0.000000e+00> : vector<32x32xf32>
    %67 = tpu.matmul %65, %62, %cst_31 {dimension_numbers = #tpu.dot_dimension_numbers<[1], [0], [0], [1], [0, 0, 1, 1], [], []>} : vector<32x128xf32>, vector<128x32xf32>, vector<32x32xf32> -> vector<32x32xf32>
    %68 = arith.addf %66, %67 : vector<32x32xf32>
    %69 = arith.mulf %68, %32 : vector<32x32xf32>
    %c0_32 = arith.constant 0 : index
    %c0_33 = arith.constant 0 : index
    %70 = vector.load %arg3[%c0_32, %c0_33] : memref<32x32xf32, #tpu.memory_space<vmem>>, vector<32x32xf32>
    %cst_34 = arith.constant dense<0.000000e+00> : vector<32x32xf32>
    %71 = tpu.matmul %69, %70, %cst_34 {dimension_numbers = #tpu.dot_dimension_numbers<[1], [0], [0], [1], [0, 0, 1, 1], [], []>} : vector<32x32xf32>, vector<32x32xf32>, vector<32x32xf32> -> vector<32x32xf32>
    %72 = arith.addf %1, %71 : vector<32x32xf32>
    %c0_35 = arith.constant 0 : index
    %c0_36 = arith.constant 0 : index
    %73 = vector.load %arg4[%c0_35, %c0_36] : memref<1x32xf32, #tpu.memory_space<vmem>>, vector<1x32xf32>
    %74 = vector.broadcast %73 : vector<1x32xf32> to vector<32x32xf32>
    %75 = arith.addf %72, %74 : vector<32x32xf32>
    %c0_37 = arith.constant 0 : index
    %c0_38 = arith.constant 0 : index
    %76 = vector.load %arg7[%c0_37, %c0_38] : memref<1x32xf32, #tpu.memory_space<vmem>>, vector<1x32xf32>
    %c0_39 = arith.constant 0 : index
    %c0_40 = arith.constant 0 : index
    %77 = vector.load %arg8[%c0_39, %c0_40] : memref<1x32xf32, #tpu.memory_space<vmem>>, vector<1x32xf32>
    %cst_41 = arith.constant dense<0.000000e+00> : vector<32xf32>
    %78 = vector.multi_reduction <add>, %75, %cst_41 [1] : vector<32x32xf32> to vector<32xf32>
    %79 = vector.shape_cast %78 : vector<32xf32> to vector<32x1xf32>
    %cst_42 = arith.constant 3.200000e+01 : f32
    %80 = vector.broadcast %cst_42 : f32 to vector<32x1xf32>
    %81 = arith.divf %79, %80 : vector<32x1xf32>
    %82 = vector.broadcast %81 : vector<32x1xf32> to vector<32x32xf32>
    %83 = arith.subf %75, %82 : vector<32x32xf32>
    %84 = arith.mulf %83, %83 : vector<32x32xf32>
    %cst_43 = arith.constant dense<0.000000e+00> : vector<32xf32>
    %85 = vector.multi_reduction <add>, %84, %cst_43 [1] : vector<32x32xf32> to vector<32xf32>
    %86 = vector.shape_cast %85 : vector<32xf32> to vector<32x1xf32>
    %cst_44 = arith.constant 3.200000e+01 : f32
    %87 = vector.broadcast %cst_44 : f32 to vector<32x1xf32>
    %88 = arith.divf %86, %87 : vector<32x1xf32>
    %89 = vector.broadcast %81 : vector<32x1xf32> to vector<32x32xf32>
    %90 = arith.subf %75, %89 : vector<32x32xf32>
    %cst_45 = arith.constant 9.99999974E-6 : f32
    %91 = vector.broadcast %cst_45 : f32 to vector<32x1xf32>
    %92 = arith.addf %88, %91 : vector<32x1xf32>
    %93 = math.rsqrt %92 : vector<32x1xf32>
    %94 = vector.broadcast %93 : vector<32x1xf32> to vector<32x32xf32>
    %95 = arith.mulf %90, %94 : vector<32x32xf32>
    %96 = vector.broadcast %76 : vector<1x32xf32> to vector<32x32xf32>
    %97 = arith.mulf %95, %96 : vector<32x32xf32>
    %98 = vector.broadcast %77 : vector<1x32xf32> to vector<32x32xf32>
    %99 = arith.addf %97, %98 : vector<32x32xf32>
    %c0_46 = arith.constant 0 : index
    %c0_47 = arith.constant 0 : index
    %100 = vector.load %arg9[%c0_46, %c0_47] : memref<32x64xf32, #tpu.memory_space<vmem>>, vector<32x64xf32>
    %cst_48 = arith.constant dense<0.000000e+00> : vector<32x64xf32>
    %101 = tpu.matmul %99, %100, %cst_48 {dimension_numbers = #tpu.dot_dimension_numbers<[1], [0], [0], [1], [0, 0, 1, 1], [], []>} : vector<32x32xf32>, vector<32x64xf32>, vector<32x64xf32> -> vector<32x64xf32>
    %c0_49 = arith.constant 0 : index
    %c0_50 = arith.constant 0 : index
    %102 = vector.load %arg10[%c0_49, %c0_50] : memref<1x64xf32, #tpu.memory_space<vmem>>, vector<1x64xf32>
    %103 = vector.broadcast %102 : vector<1x64xf32> to vector<32x64xf32>
    %104 = arith.addf %101, %103 : vector<32x64xf32>
    %cst_51 = arith.constant 0.000000e+00 : f32
    %105 = vector.broadcast %cst_51 : f32 to vector<32x64xf32>
    %106 = arith.maximumf %104, %105 : vector<32x64xf32>
    %c0_52 = arith.constant 0 : index
    %c0_53 = arith.constant 0 : index
    %107 = vector.load %arg11[%c0_52, %c0_53] : memref<64x32xf32, #tpu.memory_space<vmem>>, vector<64x32xf32>
    %cst_54 = arith.constant dense<0.000000e+00> : vector<32x32xf32>
    %108 = tpu.matmul %106, %107, %cst_54 {dimension_numbers = #tpu.dot_dimension_numbers<[1], [0], [0], [1], [0, 0, 1, 1], [], []>} : vector<32x64xf32>, vector<64x32xf32>, vector<32x32xf32> -> vector<32x32xf32>
    %c0_55 = arith.constant 0 : index
    %c0_56 = arith.constant 0 : index
    %109 = vector.load %arg12[%c0_55, %c0_56] : memref<1x32xf32, #tpu.memory_space<vmem>>, vector<1x32xf32>
    %110 = vector.broadcast %109 : vector<1x32xf32> to vector<32x32xf32>
    %111 = arith.addf %108, %110 : vector<32x32xf32>
    %112 = arith.addf %75, %111 : vector<32x32xf32>
    %113 = vector.shape_cast %112 : vector<32x32xf32> to vector<1x32x32xf32>
    %c0_57 = arith.constant 0 : index
    %c0_58 = arith.constant 0 : index
    %c0_59 = arith.constant 0 : index
    %114 = vector.load %arg18[%c0_57, %c0_58, %c0_59] : memref<1x32x32xf32, #tpu.memory_space<vmem>>, vector<1x32x32xf32>
    tpu.vector_store %arg18[%c0_57, %c0_58, %c0_59], %113 {strides = array<i32>} : memref<1x32x32xf32, #tpu.memory_space<vmem>>, vector<1x32x32xf32>,
    return
  }
  func.func @transform_0(%arg0: i32) -> (i32, i32, i32) {
    %c0_i32 = arith.constant 0 : i32
    %c0_i32_0 = arith.constant 0 : i32
    %c0_i32_1 = arith.constant 0 : i32
    return %arg0, %c0_i32, %c0_i32_0 : i32, i32, i32
  }
  func.func @transform_1(%arg0: i32) -> (i32, i32) {
    %c0_i32 = arith.constant 0 : i32
    %c0_i32_0 = arith.constant 0 : i32
    %c0_i32_1 = arith.constant 0 : i32
    return %c0_i32, %c0_i32_0 : i32, i32
  }
  func.func @transform_2(%arg0: i32) -> (i32, i32) {
    %c0_i32 = arith.constant 0 : i32
    %c0_i32_0 = arith.constant 0 : i32
    %c0_i32_1 = arith.constant 0 : i32
    return %c0_i32, %c0_i32_0 : i32, i32
  }
  func.func @transform_3(%arg0: i32) -> (i32, i32) {
    %c0_i32 = arith.constant 0 : i32
    %c0_i32_0 = arith.constant 0 : i32
    %c0_i32_1 = arith.constant 0 : i32
    return %c0_i32, %c0_i32_0 : i32, i32
  }
  func.func @transform_4(%arg0: i32) -> (i32, i32) {
    %c0_i32 = arith.constant 0 : i32
    %c0_i32_0 = arith.constant 0 : i32
    %c0_i32_1 = arith.constant 0 : i32
    return %c0_i32, %c0_i32_0 : i32, i32
  }
  func.func @transform_5(%arg0: i32) -> (i32, i32) {
    %c0_i32 = arith.constant 0 : i32
    %c0_i32_0 = arith.constant 0 : i32
    %c0_i32_1 = arith.constant 0 : i32
    return %c0_i32, %c0_i32_0 : i32, i32
  }
  func.func @transform_6(%arg0: i32) -> (i32, i32) {
    %c0_i32 = arith.constant 0 : i32
    %c0_i32_0 = arith.constant 0 : i32
    %c0_i32_1 = arith.constant 0 : i32
    return %c0_i32, %c0_i32_0 : i32, i32
  }
  func.func @transform_7(%arg0: i32) -> (i32, i32) {
    %c0_i32 = arith.constant 0 : i32
    %c0_i32_0 = arith.constant 0 : i32
    %c0_i32_1 = arith.constant 0 : i32
    return %c0_i32, %c0_i32_0 : i32, i32
  }
  func.func @transform_8(%arg0: i32) -> (i32, i32) {
    %c0_i32 = arith.constant 0 : i32
    %c0_i32_0 = arith.constant 0 : i32
    %c0_i32_1 = arith.constant 0 : i32
    return %c0_i32, %c0_i32_0 : i32, i32
  }
  func.func @transform_9(%arg0: i32) -> (i32, i32) {
    %c0_i32 = arith.constant 0 : i32
    %c0_i32_0 = arith.constant 0 : i32
    %c0_i32_1 = arith.constant 0 : i32
    return %c0_i32, %c0_i32_0 : i32, i32
  }
  func.func @transform_10(%arg0: i32) -> (i32, i32) {
    %c0_i32 = arith.constant 0 : i32
    %c0_i32_0 = arith.constant 0 : i32
    %c0_i32_1 = arith.constant 0 : i32
    return %c0_i32, %c0_i32_0 : i32, i32
  }
  func.func @transform_11(%arg0: i32) -> (i32, i32) {
    %c0_i32 = arith.constant 0 : i32
    %c0_i32_0 = arith.constant 0 : i32
    %c0_i32_1 = arith.constant 0 : i32
    return %c0_i32, %c0_i32_0 : i32, i32
  }
  func.func @transform_12(%arg0: i32) -> (i32, i32) {
    %c0_i32 = arith.constant 0 : i32
    %c0_i32_0 = arith.constant 0 : i32
    %c0_i32_1 = arith.constant 0 : i32
    return %c0_i32, %c0_i32_0 : i32, i32
  }
  func.func @transform_13(%arg0: i32) -> (i32, i32) {
    %c0_i32 = arith.constant 0 : i32
    %c0_i32_0 = arith.constant 0 : i32
    %c0_i32_1 = arith.constant 0 : i32
    return %c0_i32, %c0_i32_0 : i32, i32
  }
  func.func @transform_14(%arg0: i32) -> (i32, i32) {
    %c0_i32 = arith.constant 0 : i32
    %c0_i32_0 = arith.constant 0 : i32
    %c0_i32_1 = arith.constant 0 : i32
    return %c0_i32, %c0_i32_0 : i32, i32
  }
  func.func @transform_15(%arg0: i32) -> (i32, i32) {
    %c0_i32 = arith.constant 0 : i32
    %c0_i32_0 = arith.constant 0 : i32
    %c0_i32_1 = arith.constant 0 : i32
    return %c0_i32, %c0_i32_0 : i32, i32
  }
  func.func @transform_16(%arg0: i32) -> (i32, i32) {
    %c0_i32 = arith.constant 0 : i32
    %c0_i32_0 = arith.constant 0 : i32
    %c0_i32_1 = arith.constant 0 : i32
    return %c0_i32, %c0_i32_0 : i32, i32
  }
  func.func @transform_17(%arg0: i32) -> (i32, i32, i32) {
    %c0_i32 = arith.constant 0 : i32
    %c0_i32_0 = arith.constant 0 : i32
    %c0_i32_1 = arith.constant 0 : i32
    return %arg0, %c0_i32, %c0_i32_0 : i32, i32, i32
  }
  func.func @transform_18(%arg0: i32) -> (i32, i32, i32) {
    %c0_i32 = arith.constant 0 : i32
    %c0_i32_0 = arith.constant 0 : i32
    %c0_i32_1 = arith.constant 0 : i32
    return %arg0, %c0_i32, %c0_i32_0 : i32, i32, i32
  }
}

</mosaic_0001>

<bundles_post_ra>
// kernel: tpu_custom_call.1
= control target key start
LH: loop header
LB: loop body
LE: loop exit
PB: predicated region body
PF: predicated region fallthrough
CT: control target
= control target key end

     0   :  { %s3467_s0 = inlined_call_operand.vmem [shape: f32[2,32,32], index: 0, kind: input, shape index: {}]   ;;  %s3468_s1 = inlined_call_operand.vmem [shape: f32[32,384], index: 1, kind: input, shape index: {}]   ;;  %s3469_s2 = inlined_call_operand.vmem [shape: f32[32,32], index: 2, kind: input, shape index: {}]   ;;  %s3470_s3 = inlined_call_operand.vmem [shape: f32[1,32], index: 3, kind: input, shape index: {}]   ;;  %s3471_s4 = inlined_call_operand.vmem [shape: f32[1,32], index: 4, kind: input, shape index: {}]   ;;  %s3472_s5 = inlined_call_operand.vmem [shape: f32[1,32], index: 5, kind: input, shape index: {}]   ;;  %s3473_s6 = inlined_call_operand.vmem [shape: f32[1,32], index: 6, kind: input, shape index: {}]   ;;  %s3474_s7 = inlined_call_operand.vmem [shape: f32[1,32], index: 7, kind: input, shape index: {}]   ;;  %s3475_s8 = inlined_call_operand.vmem [shape: f32[32,64], index: 8, kind: input, shape index: {}]   ;;  %s3476_s9 = inlined_call_operand.vmem [shape: f32[1,64], index: 9, kind: input, shape index: {}]   ;;  %s3477_s10 = inlined_call_operand.vmem [shape: f32[64,32], index: 10, kind: input, shape index: {}]   ;;  %s3478_s11 = inlined_call_operand.vmem [shape: f32[1,32], index: 11, kind: input, shape index: {}]   ;;  %s3479_s12 = inlined_call_operand.vmem [shape: f32[128,32], index: 12, kind: input, shape index: {}]   ;;  %s3480_s13 = inlined_call_operand.vmem [shape: f32[32,128], index: 13, kind: input, shape index: {}]   ;;  %s3481_s14 = inlined_call_operand.vmem [shape: f32[32,128], index: 14, kind: input, shape index: {}]   ;;  %s3482_s15 = inlined_call_operand.vmem [shape: f32[128,128], index: 15, kind: input, shape index: {}]   ;;  %s3483_s16 = inlined_call_operand.vmem [shape: f32[128,32], index: 16, kind: input, shape index: {}]   ;;  %s3484_s17 = inlined_call_operand.hbm [shape: f32[2,32,32], index: 17, kind: output, shape index: {0}]   ;;  %s3485_s18 = inlined_call_operand.hbm [shape: f32[2,32,128], index: 18, kind: output, shape index: {1}]  }
   0x1   :  { %3496 = sst [smem:[#allocation13_spill]] %s3467_s0 }
   0x2   :  { %3497 = sst [smem:[#allocation14_spill]] %s3468_s1 }
   0x3   :  { %3498 = sst [smem:[#allocation15_spill]] %s3469_s2 }
   0x4   :  { %3499 = sst [smem:[#allocation16_spill]] %s3470_s3 }
   0x5   :  { %3500 = sst [smem:[#allocation17_spill]] %s3471_s4 }
   0x6   :  { %3501 = sst [smem:[#allocation18_spill]] %s3472_s5 }
   0x7   :  { %24 = vsyncpa [#allocation3], 0 }
   0x8   :  { %26 = vsyncpa [#allocation3 + $0x1], 0 }
   0x9   :  { %27 = vsyncpa [#allocation5], 0 }
   0xa   :  { %29 = vsyncpa [#allocation5 + $0x1], 0  ;;  %s2759_s27 = smov 0   ;;  %s2761_s28 = smov 0  }
   0xb   :  { %s2763_s29 = smov 0   ;;  %s2765_s30 = smov 0  }
   0xc LB: > { %3502 = sst [smem:[#allocation8_spill]] %s2645_s27  ;;  %s2780_s0 = sadd.s32 4294967295, %s2657_s30   ;;  %s2657_s30 = sphi %s2765_s30, %s3521_s30   ;;  %s2653_s29 = sphi %s2763_s29, %s3523_s29   ;;  %s2649_s28 = sphi %s2761_s28, %s3525_s28   ;;  %s2645_s27 = sphi %s2759_s27, %s3524_s27  }
   0xd   : > { %3503 = sst [smem:[#allocation9_spill]] %s2653_s29  ;;  %s2032_s19 = sadd.s32 4294967294, %s2657_s30  }
   0xe   : > { %s2784_s1 = sadd.s32 1, %s2657_s30   ;;  %s404_s20 = sadd.s32 1, %s2653_s29 }
   0xf   : > { %3504 = sst [smem:[#allocation10_spill]] %s2784_s1  ;;  %s401_s21 = ssub.s32 %s2657_s30, %s2784_s1 }
  0x10   : > { %p414_p0 = scmp.ne.s32.totalorder %s2653_s29, %s2649_s28  ;;  %p402_p1 = scmp.eq.s32.totalorder %s401_s21, 0 }
  0x11   : > { %p415_p2 = scmp.eq.s32.totalorder %s2780_s0, 1  ;;  %p420_p3 = scmp.ne.s32.totalorder %s2649_s28, %s2645_s27 }
  0x12   : > { %p421_p4 = scmp.eq.s32.totalorder %s2032_s19, 1  ;;  %p2035_p7 = scmp.ge.s32.totalorder %s2657_s30, 1 }
  0x13   : > { %s2795_s22 = scalar_select %p402_p1, %s2653_s29, %s404_s20  }
  0x14   : > { %p2797_p5 = por %p415_p2, %p414_p0  ;;  %p2801_p6 = por %p421_p4, %p420_p3 }
  0x15   : > { %3505 = sst [smem:[#allocation11_spill]] %s2795_s22  ;;  %p521_p8 = scmp.lt.s32.totalorder %s2657_s30, 3 }
  0x16   : > { %s3507_s23 = scalar_select %p2801_p6, 1, 0 }
  0x17   : > { %p522_p9 = pnand %p2035_p7, %p521_p8 }
  0x18   : > { %3508 = sst [smem:[#allocation12_spill]] %s3507_s23  ;;  %p580_p10 = scmp.lt.s32.totalorder (!%p522_p9), %s2780_s0, 1 }
  0x19   : > { %525 = sbr.rel (%p522_p9) target bundleno = 2353 (0x931), region = 88  ;;  %s3509_s20 = sld [smem:[#allocation13_spill]] (!%p522_p9) }
  0x1a   : > { %s3510_s26 = sld [smem:[#allocation14_spill]] (!%p522_p9)  ;;  %s3235_s22 = sand.u32 (!%p522_p9), 1, %s2649_s28  }
  0x1b   : > { %s3511_s4 = sld [smem:[#allocation17_spill]] (!%p522_p9)  ;;  %s3493_s19 = sshll.u32 (!%p522_p9), %s3235_s22, 5 }
  0x1c   : > { %s3512_s5 = sld [smem:[#allocation18_spill]] (!%p522_p9)  ;;  %s2660_s29 = smov (!%p522_p9), [#allocation4]  }
  0x1d   : > { %s3513_s23 = sld [smem:[#allocation15_spill]] (!%p522_p9) }
  0x1e   : > { %s581_s24 = scalar_select %p580_p10, %s2780_s0, 1  ;;  %vm591_vm0 = vcmask 261120   ;;  %v2659_v33 = vmov 0.0   ;;  %vm1797_vm1 = vcmask 523264  }
  0x1f   : > { %753 = vmatprep.mubr.f32.mxu0 %v2659_v33  ;;  %s3514_s3 = sld [smem:[#allocation16_spill]] }
  0x20   : > { %s2095_s25 = sshll.u32 %s581_s24, 5  ;;  %v675_v28 = vld [vmem:[%s3510_s26 + $0x50] sm:$0xff]  ;;  %v674_v29 = vld [vmem:[%s3510_s26 + $0x48] sm:$0xff]  ;;  %v672_v30 = vld [vmem:[%s3510_s26 + $0x38] sm:$0xff] }
  0x21   : > { %s584_s21 = scalar_lea.vmem %s3509_s20, %s2095_s25  ;;  %713 = vmatprep.subr.mxu0 %v675_v28  ;;  %v671_v31 = vld [vmem:[%s3510_s26 + $0x30] sm:$0xff]  ;;  %v676_v32 = vld [vmem:[%s3510_s26 + $0x58] sm:$0xff]  ;;  %v669_v34 = vld [vmem:[%s3510_s26 + $0x20] sm:$0xff]  ;;  %s3248_s20 = scalar_lea.vmem [#allocation4], %s3493_s19 }
  0x22   : > { %v2812_v0 = vld [vmem:[%s584_s21] sm:$0xff]  ;;  %v2814_v1 = vld [vmem:[%s584_s21 + $0x10] sm:$0xff]  ;;  %v2816_v2 = vld [vmem:[%s584_s21 + $0x8] sm:$0xff]  ;;  %714 = vmatpush1.msra.mxu0 %v674_v29  ;;  %2234 = vmatprep.subr.mxu1 %v676_v32  ;;  %s1938_s19 = sshll.u32 %s3248_s20, 4  ;;  %s3376_s19 = int_to_ptr.vmem [resolvable:$true] %s1938_s19 }
  0x23   : > { %v592_v3 = vsel %vm591_vm0, %v2812_v0, 0.0  ;;  %v598_v4 = vsel %vm591_vm0, %v2814_v1, 0.0  ;;  %v2822_v5 = vld [vmem:[%s584_s21 + $0x18] sm:$0xff]  ;;  %v595_v6 = vsel %vm591_vm0, %v2816_v2, 0.0  ;;  %v673_v35 = vld [vmem:[%s3510_s26 + $0x40] sm:$0xff]  ;;  %715 = vmatprep.subr.mxu0 %v672_v30  ;;  %2235 = vmatpush3.msra.mxu1 %v676_v32  ;;  %v666_v37 = vld [vmem:[%s3510_s26 + $0x8] sm:$0xff] }
  0x24   : > { %593 = vadd.xlane.f32.xlu0 %v592_v3  ;;  %599 = vadd.xlane.f32.xlu1 %v598_v4  ;;  %v601_v7 = vsel %vm591_vm0, %v2822_v5, 0.0  ;;  %v668_v36 = vld [vmem:[%s3510_s26 + $0x18] sm:$0xff]  ;;  %v665_v38 = vld [vmem:[%s3510_s26] sm:$0xff]  ;;  %v670_v39 = vld [vmem:[%s3510_s26 + $0x28] sm:$0xff]  ;;  %s2567_s25 = scalar_lea.vmem %s3376_s19, 512 }
  0x25   : > { %716 = vmatpush1.msra.mxu0 %v671_v31  ;;  %2236 = vmatprep.subr.mxu1 %v673_v35  ;;  %v667_v40 = vld [vmem:[%s3510_s26 + $0x10] sm:$0xff]  ;;  %v2040_v54 = vld [vmem:[%s3511_s4] ss:$0 sm:$0xff]  ;;  %v872_v30 = vld [vmem:[%s3479_s12 + $0x48] sm:$0xff]  ;;  %s3494_s4 = sshll.u32 %s2780_s0, 9  ;;  %p2568_p11 = scmp.ne.s32.totalorder %s3376_s19, %s2567_s25 }
  0x26   : > { %717 = vmatprep.subr.mxu0 %v669_v34  ;;  %2237 = vmatpush3.msra.mxu1 %v673_v35  ;;  %v2041_v56 = vld [vmem:[%s3512_s5] ss:$0 sm:$0xff]  ;;  %v873_v28 = vld [vmem:[%s3479_s12 + $0x50] sm:$0xff]  ;;  %v870_v34 = vld [vmem:[%s3479_s12 + $0x38] sm:$0xff]  ;;  %s3374_s21 = scalar_lea.hbm %s3485_s18, %s3494_s4 }
  0x27   : > { %718 = vmatpush1.msra.mxu0 %v668_v36  ;;  %2238 = vmatprep.subr.mxu1 %v670_v39  ;;  %v871_v32 = vld [vmem:[%s3479_s12 + $0x40] sm:$0xff]  ;;  %v869_v36 = vld [vmem:[%s3479_s12 + $0x30] sm:$0xff]  ;;  %p2569_p12 = pnand %p2568_p11, %p2797_p5 }
  0x28   : > { %596 = vadd.xlane.f32.xlu0 %v595_v6  ;;  %602 = vadd.xlane.f32.xlu1 %v601_v7 }
  0x29   : > { %719 = vmatprep.subr.mxu0 %v666_v37  ;;  %2239 = vmatpush3.msra.mxu1 %v670_v39  ;;  %p2570_p13 = pneg %p2569_p12 }
  0x2a   : > { %720 = vmatpush1.msra.mxu0 %v665_v38  ;;  %2240 = vmatprep.subr.mxu1 %v667_v40  ;;  %v868_v38 = vld [vmem:[%s3479_s12 + $0x28] sm:$0xff] }
  0x2b   : > { %2241 = vmatpush3.msra.mxu1 %v667_v40  ;;  %v867_v40 = vld [vmem:[%s3479_s12 + $0x20] sm:$0xff] }
  0xad   : > { %v594_v8 = vpop.xlane.xlu0 %593  ;;  %v600_v9 = vpop.xlane.xlu1 %599 }
  0xae   : > { %v605_v10 = vmul.f32 0.03125, %v594_v8  ;;  %v607_v11 = vmul.f32 0.03125, %v600_v9 }
  0xb0   : > { %v2829_v12 = vsub.f32 %v2812_v0, %v605_v10  ;;  %v2832_v13 = vsub.f32 %v2814_v1, %v607_v11 }
  0xb1   : > { %v597_v14 = vpop.xlane.xlu0 %596  ;;  %v603_v15 = vpop.xlane.xlu1 %602 }
  0xb2   : > { %v606_v16 = vmul.f32 0.03125, %v597_v14  ;;  %v608_v17 = vmul.f32 0.03125, %v603_v15  ;;  %v613_v18 = vmul.f32 %v2829_v12, %v2829_v12  ;;  %v615_v19 = vmul.f32 %v2832_v13, %v2832_v13 }
  0xb4   : > { %v2839_v20 = vsub.f32 %v2816_v2, %v606_v16  ;;  %v2842_v21 = vsub.f32 %v2822_v5, %v608_v17  ;;  %v617_v22 = vsel %vm591_vm0, %v613_v18, 0.0  ;;  %v623_v23 = vsel %vm591_vm0, %v615_v19, 0.0  ;;  %v878_v17 = vld [vmem:[%s3479_s12 + $0x78] sm:$0xff]  ;;  %v877_v18 = vld [vmem:[%s3479_s12 + $0x70] sm:$0xff] }
  0xb5   : > { %618 = vadd.xlane.f32.xlu0 %v617_v22  ;;  %v876_v22 = vld [vmem:[%s3479_s12 + $0x68] sm:$0xff] }
  0xb6   : > { %v614_v24 = vmul.f32 %v2839_v20, %v2839_v20  ;;  %v616_v25 = vmul.f32 %v2842_v21, %v2842_v21 }
  0xb8   : > { %v620_v26 = vsel %vm591_vm0, %v614_v24, 0.0  ;;  %v626_v27 = vsel %vm591_vm0, %v616_v25, 0.0  ;;  %v875_v24 = vld [vmem:[%s3479_s12 + $0x60] sm:$0xff] }
  0xb9   : > { %624 = vadd.xlane.f32.xlu0 %v623_v23  ;;  %621 = vadd.xlane.f32.xlu1 %v620_v26  ;;  %v874_v26 = vld [vmem:[%s3479_s12 + $0x58] sm:$0xff] }
  0xbd   : > { %627 = vadd.xlane.f32.xlu1 %v626_v27 }
 0x13e   : > { %v619_v41 = vpop.xlane.xlu0 %618 }
 0x13f   : > { %v629_v42 = vmul.f32 0.03125, %v619_v41 }
 0x141   : > { %v633_v43 = vadd.f32 1e-05, %v629_v42  ;;  %v866_v42 = vld [vmem:[%s3479_s12 + $0x18] sm:$0xff] }
 0x142   : > { %v622_v44 = vpop.xlane.xlu1 %621  ;;  %v625_v45 = vpop.xlane.xlu0 %624 }
 0x143   : > { %2535 = vrsqrt.f32 %v633_v43  ;;  %v630_v46 = vmul.f32 0.03125, %v622_v44  ;;  %v631_v47 = vmul.f32 0.03125, %v625_v45  ;;  %v865_v44 = vld [vmem:[%s3479_s12 + $0x10] sm:$0xff] }
 0x145   : > { %v634_v48 = vadd.f32 1e-05, %v630_v46  ;;  %v635_v49 = vadd.f32 1e-05, %v631_v47  ;;  %v864_v46 = vld [vmem:[%s3479_s12 + $0x8] sm:$0xff] }
 0x146   : > { %v628_v50 = vpop.xlane.xlu1 %627 }
 0x147   : > { %2537 = vrsqrt.f32 %v634_v48  ;;  %v632_v51 = vmul.f32 0.03125, %v628_v50  ;;  %v863_v48 = vld [vmem:[%s3479_s12] sm:$0xff] }
 0x148   : > { %2539 = vrsqrt.f32 %v635_v49 }
 0x149   : > { %v636_v52 = vadd.f32 1e-05, %v632_v51  ;;  %v3009_v51 = vld [vmem:[%s3482_s15 + $0x78] sm:$0xff] }
 0x14a   : > { %2286 = vmatprep.subr.mxu1 %v3009_v51 }
 0x14b   : > { %2541 = vrsqrt.f32 %v636_v52  ;;  %v3014_v52 = vld [vmem:[%s3482_s15 + $0x70] sm:$0xff] }
 0x150   : > { %v2536_v53 = vpop.eup %2535 }
 0x151   : > { %v641_v55 = vmul.f32 %v2536_v53, %v2829_v12  ;;  %v3021_v53 = vld [vmem:[%s3482_s15 + $0x68] sm:$0xff] }
 0x153   : > { %v651_v57 = vmul.f32 %v2040_v54, %v641_v55 }
 0x154   : > { %v2538_v58 = vpop.eup %2537 }
 0x155   : > { %v2540_v59 = vpop.eup %2539  ;;  %v661_v60 = vadd.f32 %v2041_v56, %v651_v57  ;;  %v642_v61 = vmul.f32 %v2538_v58, %v2839_v20 }
 0x156   : > { %v643_v62 = vmul.f32 %v2540_v59, %v2832_v13  ;;  %v898_v59 = vld [vmem:[%s3480_s13 + $0x18] sm:$0xff] }
 0x157   : > { %2042 = vmatmul.mubr.msk.f32.vlgmr.msra.gmra.mxu0 %vm591_vm0, %v661_v60  ;;  %2242 = vmatprep.mubr.msk.f32.mxu1 %vm591_vm0, %v661_v60  ;;  %v652_v63 = vmul.f32 %v2040_v54, %v642_v61 }
 0x158   : > { %v2542_v3 = vpop.eup %2541  ;;  %759 = vmatprep.mubr.f32.mxu0 %v2659_v33  ;;  %v653_v4 = vmul.f32 %v2040_v54, %v643_v62  ;;  %v897_v62 = vld [vmem:[%s3480_s13 + $0x10] sm:$0xff] }
 0x159   : > { %v662_v6 = vadd.f32 %v2041_v56, %v652_v63  ;;  %v644_v7 = vmul.f32 %v2542_v3, %v2842_v21 }
 0x15a   : > { %v663_v8 = vadd.f32 %v2041_v56, %v653_v4 }
 0x15b   : > { %2043 = vmatmul.mubr.msk.f32.gmra.mxu0 %vm591_vm0, %v662_v6  ;;  %2243 = vmatmul.mubr.msk.f32.vlgmr.msra.gmra.mxu1 %vm591_vm0, %v662_v6  ;;  %v654_v9 = vmul.f32 %v2040_v54, %v644_v7  ;;  %v896_v54 = vld [vmem:[%s3480_s13 + $0x8] sm:$0xff]  ;;  %v3042_v6 = vld [vmem:[%s3482_s15 + $0x60] sm:$0xff]  ;;  %v3049_v7 = vld [vmem:[%s3482_s15 + $0x58] sm:$0xff] }
 0x15c   : > { %2245 = vmatprep.mubr.msk.f32.mxu1 %vm591_vm0, %v663_v8  ;;  %765 = vmatprep.mubr.f32.mxu0 %v2659_v33 }
 0x15d   : > { %v664_v10 = vadd.f32 %v2041_v56, %v654_v9  ;;  %2287 = vmatpush3.msra.mxu1 %v3009_v51  ;;  %v895_v56 = vld [vmem:[%s3480_s13] sm:$0xff]  ;;  %v3063_v9 = vld [vmem:[%s3482_s15 + $0x48] sm:$0xff] }
 0x15e   : > { %2288 = vmatprep.subr.mxu1 %v3014_v52 }
 0x15f   : > { %2044 = vmatmul.mubr.msk.f32.gmra.mxu0 %vm591_vm0, %v663_v8  ;;  %2246 = vmatmul.mubr.msk.f32.gmra.mxu1 %vm591_vm0, %v664_v10  ;;  %v3056_v8 = vld [vmem:[%s3482_s15 + $0x50] sm:$0xff] }
 0x160   : > { %771 = vmatprep.mubr.f32.mxu0 %v2659_v33  ;;  %2289 = vmatpush3.msra.mxu1 %v3014_v52 }
 0x161   : > { %2290 = vmatprep.subr.mxu1 %v3021_v53 }
 0x162   : > { %2291 = vmatpush3.msra.mxu1 %v3021_v53 }
 0x163   : > { %2045 = vmatmul.mubr.msk.f32.gmra.mxu0 %vm591_vm0, %v664_v10  ;;  %2292 = vmatprep.subr.mxu1 %v3042_v6  ;;  %v3070_v10 = vld [vmem:[%s3482_s15 + $0x40] sm:$0xff] }
 0x164   : > { %2293 = vmatpush3.msra.mxu1 %v3042_v6 }
 0x165   : > { %2294 = vmatprep.subr.mxu1 %v3049_v7 }
 0x166   : > { %2295 = vmatpush3.msra.mxu1 %v3049_v7 }
 0x167   : > { %2296 = vmatprep.subr.mxu1 %v3056_v8 }
 0x168   : > { %2297 = vmatpush3.msra.mxu1 %v3056_v8 }
 0x169   : > { %2298 = vmatprep.subr.mxu1 %v3063_v9 }
 0x16a   : > { %2299 = vmatpush3.msra.mxu1 %v3063_v9 }
 0x16b   : > { %2300 = vmatprep.subr.mxu1 %v3070_v10 }
 0x16c   : > { %2301 = vmatpush3.msra.mxu1 %v3070_v10 }
 0x217   : > { %v2910_v11 = vpop.f32.mrf.mxu0 }
 0x218   : > { %v891_v25 = vmul.f32 %v875_v24, %v2910_v11  ;;  %v887_v33 = vmul.f32 %v871_v32, %v2910_v11  ;;  %v883_v41 = vmul.f32 %v867_v40, %v2910_v11  ;;  %v879_v49 = vmul.f32 %v863_v48, %v2910_v11  ;;  %v3077_v11 = vld [vmem:[%s3482_s15 + $0x38] sm:$0xff]  ;;  %v1292_v48 = vld [vmem:[%s3483_s16 + $0x60] sm:$0xff] }
 0x219   : > { %v757_v12 = vpop.f32.mrf.mxu0  ;;  %2302 = vmatprep.subr.mxu1 %v3077_v11 }
 0x21a   : > { %2280 = vmatprep.mubr.msk.f32.mxu0 %vm591_vm0, %v757_v12  ;;  %v3082_v12 = vld [vmem:[%s3482_s15 + $0x30] sm:$0xff]  ;;  %2303 = vmatpush3.msra.mxu1 %v3077_v11 }
 0x21b   : > { %v761_v13 = vpop.f32.mrf.mxu0  ;;  %2304 = vmatprep.subr.mxu1 %v3082_v12 }
 0x21c   : > { %v892_v23 = vmul.f32 %v876_v22, %v761_v13  ;;  %v888_v31 = vmul.f32 %v872_v30, %v761_v13  ;;  %v884_v39 = vmul.f32 %v868_v38, %v761_v13  ;;  %v880_v47 = vmul.f32 %v864_v46, %v761_v13  ;;  %v3089_v13 = vld [vmem:[%s3482_s15 + $0x28] sm:$0xff]  ;;  %2305 = vmatpush3.msra.mxu1 %v3082_v12  ;;  %v1294_v46 = vld [vmem:[%s3483_s16 + $0x70] sm:$0xff] }
 0x21d   : > { %v2913_v14 = vpop.f32.mrf.mxu0  ;;  %2306 = vmatprep.subr.mxu1 %v3089_v13 }
 0x21e   : > { %2307 = vmatpush3.msra.mxu1 %v3089_v13 }
 0x21f   : > { %v767_v15 = vpop.f32.mrf.mxu0 }
 0x220   : > { %v893_v21 = vmul.f32 %v877_v18, %v767_v15  ;;  %v889_v29 = vmul.f32 %v873_v28, %v767_v15  ;;  %v885_v37 = vmul.f32 %v869_v36, %v767_v15  ;;  %v881_v45 = vmul.f32 %v865_v44, %v767_v15  ;;  %v3103_v15 = vld [vmem:[%s3482_s15 + $0x18] sm:$0xff]  ;;  %v3124_v18 = vld [vmem:[%s3482_s15] sm:$0xff] }
 0x221   : > { %v2915_v16 = vpop.f32.mrf.mxu0 }
 0x223   : > { %v773_v19 = vpop.f32.mrf.mxu0 }
 0x224   : > { %v894_v20 = vmul.f32 %v878_v17, %v773_v19  ;;  %v890_v27 = vmul.f32 %v874_v26, %v773_v19  ;;  %v886_v35 = vmul.f32 %v870_v34, %v773_v19  ;;  %v882_v43 = vmul.f32 %v866_v42, %v773_v19  ;;  %v3117_v17 = vld [vmem:[%s3482_s15 + $0x8] sm:$0xff] }
 0x225   : > { %v775_v50 = vpop.f32.mrf.mxu0 }
 0x226   : > { %2248 = vmatprep.subr.msk.mxu0 %vm591_vm0, %v894_v20 }
 0x227   : > { %2249 = vmatpush3.xpose.msk.msra.mxu0 %vm591_vm0, %v894_v20 }
 0x228   : > { %2250 = vmatprep.subr.msk.mxu0 %vm591_vm0, %v893_v21 }
 0x22b   : > { %2251 = vmatpush3.xpose.msk.msra.mxu0 %vm591_vm0, %v893_v21 }
 0x22c   : > { %2252 = vmatprep.subr.msk.mxu0 %vm591_vm0, %v892_v23 }
 0x22f   : > { %2253 = vmatpush3.xpose.msk.msra.mxu0 %vm591_vm0, %v892_v23 }
 0x230   : > { %2254 = vmatprep.subr.msk.mxu0 %vm591_vm0, %v891_v25 }
 0x233   : > { %2255 = vmatpush3.xpose.msk.msra.mxu0 %vm591_vm0, %v891_v25 }
 0x234   : > { %2256 = vmatprep.subr.msk.mxu0 %vm591_vm0, %v890_v27 }
 0x237   : > { %2257 = vmatpush3.xpose.msk.msra.mxu0 %vm591_vm0, %v890_v27 }
 0x238   : > { %2258 = vmatprep.subr.msk.mxu0 %vm591_vm0, %v889_v29 }
 0x23b   : > { %2259 = vmatpush3.xpose.msk.msra.mxu0 %vm591_vm0, %v889_v29 }
 0x23c   : > { %2260 = vmatprep.subr.msk.mxu0 %vm591_vm0, %v888_v31 }
 0x23f   : > { %2261 = vmatpush3.xpose.msk.msra.mxu0 %vm591_vm0, %v888_v31 }
 0x240   : > { %2262 = vmatprep.subr.msk.mxu0 %vm591_vm0, %v887_v33 }
 0x243   : > { %2263 = vmatpush3.xpose.msk.msra.mxu0 %vm591_vm0, %v887_v33 }
 0x244   : > { %2264 = vmatprep.subr.msk.mxu0 %vm591_vm0, %v886_v35 }
 0x247   : > { %2265 = vmatpush3.xpose.msk.msra.mxu0 %vm591_vm0, %v886_v35 }
 0x248   : > { %2266 = vmatprep.subr.msk.mxu0 %vm591_vm0, %v885_v37 }
 0x24b   : > { %2267 = vmatpush3.xpose.msk.msra.mxu0 %vm591_vm0, %v885_v37 }
 0x24c   : > { %2268 = vmatprep.subr.msk.mxu0 %vm591_vm0, %v884_v39 }
 0x24f   : > { %2269 = vmatpush3.xpose.msk.msra.mxu0 %vm591_vm0, %v884_v39 }
 0x250   : > { %2270 = vmatprep.subr.msk.mxu0 %vm591_vm0, %v883_v41 }
 0x253   : > { %2271 = vmatpush3.xpose.msk.msra.mxu0 %vm591_vm0, %v883_v41 }
 0x254   : > { %2272 = vmatprep.subr.msk.mxu0 %vm591_vm0, %v882_v43 }
 0x257   : > { %2273 = vmatpush3.xpose.msk.msra.mxu0 %vm591_vm0, %v882_v43 }
 0x258   : > { %2274 = vmatprep.subr.msk.mxu0 %vm591_vm0, %v881_v45 }
 0x25b   : > { %2275 = vmatpush3.xpose.msk.msra.mxu0 %vm591_vm0, %v881_v45  ;;  %v1295_v45 = vld [vmem:[%s3483_s16 + $0x78] sm:$0xff] }
 0x25c   : > { %2276 = vmatprep.subr.msk.mxu0 %vm591_vm0, %v880_v47 }
 0x25f   : > { %2277 = vmatpush3.xpose.msk.msra.mxu0 %vm591_vm0, %v880_v47  ;;  %v1293_v47 = vld [vmem:[%s3483_s16 + $0x68] sm:$0xff] }
 0x260   : > { %2278 = vmatprep.subr.msk.mxu0 %vm591_vm0, %v879_v49 }
 0x263   : > { %2279 = vmatpush3.xpose.msk.msra.mxu0 %vm591_vm0, %v879_v49  ;;  %v1291_v49 = vld [vmem:[%s3483_s16 + $0x58] sm:$0xff] }
 0x264   : > { %2362 = vmatprep.subr.mxu0 %v1295_v45 }
 0x266   : > { %2281 = vmatmul.mubr.msk.f32.vlgmr.msra.gmra.mxu0 %vm591_vm0, %v2913_v14  ;;  %v3096_v14 = vld [vmem:[%s3482_s15 + $0x20] sm:$0xff] }
 0x267   : > { %2283 = vmatprep.mubr.msk.f32.mxu0 %vm591_vm0, %v2915_v16  ;;  %2308 = vmatprep.subr.mxu1 %v3096_v14  ;;  %v3110_v16 = vld [vmem:[%s3482_s15 + $0x10] sm:$0xff] }
 0x268   : > { %2309 = vmatpush3.msra.mxu1 %v3096_v14  ;;  %2363 = vmatpush3.msra.mxu0 %v1295_v45 }
 0x269   : > { %2310 = vmatprep.subr.mxu1 %v3103_v15  ;;  %2364 = vmatprep.subr.mxu0 %v1294_v46 }
 0x26a   : > { %2284 = vmatmul.mubr.msk.f32.gmra.mxu0 %vm591_vm0, %v775_v50  ;;  %2311 = vmatpush3.msra.mxu1 %v3103_v15  ;;  %v1290_v50 = vld [vmem:[%s3483_s16 + $0x50] sm:$0xff] }
 0x26b   : > { %2312 = vmatprep.subr.mxu1 %v3110_v16  ;;  %2365 = vmatpush3.msra.mxu0 %v1294_v46 }
 0x26c   : > { %2313 = vmatpush3.msra.mxu1 %v3110_v16  ;;  %2366 = vmatprep.subr.mxu0 %v1293_v47 }
 0x26d   : > { %2314 = vmatprep.subr.mxu1 %v3117_v17  ;;  %2367 = vmatpush3.msra.mxu0 %v1293_v47 }
 0x26e   : > { %2315 = vmatpush3.msra.mxu1 %v3117_v17  ;;  %2368 = vmatprep.subr.mxu0 %v1292_v48 }
 0x26f   : > { %2316 = vmatprep.subr.mxu1 %v3124_v18  ;;  %2369 = vmatpush3.msra.mxu0 %v1292_v48 }
 0x270   : > { %2317 = vmatpush3.msra.mxu1 %v3124_v18  ;;  %2370 = vmatprep.subr.mxu0 %v1291_v49 }
 0x271   : > { %2324 = vmatprep.subr.mxu1 %v3009_v51  ;;  %2371 = vmatpush3.msra.mxu0 %v1291_v49 }
 0x272   : > { %2372 = vmatprep.subr.mxu0 %v1290_v50 }
 0x273   : > { %2373 = vmatpush3.msra.mxu0 %v1290_v50 }
 0x326   : > { %v2282_v55 = vpop.f32.mrf.mxu0 }
 0x327   : > { %v1031_v57 = vadd.f32 %v2282_v55, %v896_v54  ;;  %v1286_v54 = vld [vmem:[%s3483_s16 + $0x30] sm:$0xff]  ;;  %v1285_v55 = vld [vmem:[%s3483_s16 + $0x28] sm:$0xff] }
 0x328   : > { %v1025_v58 = vpop.f32.mrf.mxu0 }
 0x329   : > { %v1026_v60 = vadd.f32 %v1025_v58, %v895_v56  ;;  %1046 = vmax.xlane.f32.xlu1 %v1031_v57  ;;  %v1284_v56 = vld [vmem:[%s3483_s16 + $0x20] sm:$0xff]  ;;  %v1282_v58 = vld [vmem:[%s3483_s16 + $0x10] sm:$0xff] }
 0x32a   : > { %v2285_v61 = vpop.f32.mrf.mxu0 }
 0x32b   : > { %v1041_v63 = vadd.f32 %v2285_v61, %v898_v59  ;;  %1044 = vmax.xlane.f32.xlu0 %v1026_v60  ;;  %v1281_v59 = vld [vmem:[%s3483_s16 + $0x8] sm:$0xff]  ;;  %v3226_v61 = vpop.f32.mrf.mxu1 }
 0x32c   : > { %v1035_v3 = vpop.f32.mrf.mxu0 }
 0x32d   : > { %v1036_v4 = vadd.f32 %v1035_v3, %v897_v62  ;;  %1050 = vmax.xlane.f32.xlu1 %v1041_v63  ;;  %v3228_v62 = vpop.f32.mrf.mxu1 }
 0x32f   : > { %1048 = vmax.xlane.f32.xlu0 %v1036_v4 }
 0x3b2   : > { %v1047_v19 = vpop.xlane.xlu1 %1046 }
 0x3b3   : > { %v1053_v20 = vsub.f32 %v1031_v57, %v1047_v19  ;;  %v1283_v57 = vld [vmem:[%s3483_s16 + $0x18] sm:$0xff] }
 0x3b4   : > { %v1045_v21 = vpop.xlane.xlu0 %1044 }
 0x3b5   : > { %v1058_v22 = vmul.f32 1.442695, %v1053_v20  ;;  %v1052_v23 = vsub.f32 %v1026_v60, %v1045_v21  ;;  %v1280_v60 = vld [vmem:[%s3483_s16] sm:$0xff]  ;;  %v1273_v21 = vld [vmem:[%s3481_s14 + $0x8] sm:$0xff] }
 0x3b6   : > { %v1051_v24 = vpop.xlane.xlu1 %1050  ;;  %v1272_v20 = vld [vmem:[%s3481_s14] sm:$0xff] }
 0x3b7   : > { %v1056_v25 = vmul.f32 1.442695, %v1052_v23  ;;  %v1055_v26 = vsub.f32 %v1041_v63, %v1051_v24  ;;  %2543 = vpow2.f32 %v1058_v22  ;;  %v3230_v63 = vpop.f32.mrf.mxu1 }
 0x3b8   : > { %v1049_v27 = vpop.xlane.xlu0 %1048 }
 0x3b9   : > { %2545 = vpow2.f32 %v1056_v25  ;;  %v1062_v28 = vmul.f32 1.442695, %v1055_v26  ;;  %v1054_v29 = vsub.f32 %v1036_v4, %v1049_v27  ;;  %v3232_v3 = vpop.f32.mrf.mxu1 }
 0x3bb   : > { %v1060_v30 = vmul.f32 1.442695, %v1054_v29  ;;  %2547 = vpow2.f32 %v1062_v28  ;;  %v1274_v28 = vld [vmem:[%s3481_s14 + $0x10] sm:$0xff]  ;;  %v1275_v29 = vld [vmem:[%s3481_s14 + $0x18] sm:$0xff] }
 0x3bd   : > { %2549 = vpow2.f32 %v1060_v30 }
 0x3c4   : > { %v3131_v31 = vpop.eup %2543 }
 0x3c6   : > { %v3133_v32 = vpop.eup %2545 }
 0x3c7   : > { %v1080_v33 = vpack.c.bf16 %v3131_v31, %v3133_v32 }
 0x3c8   : > { %v3137_v34 = vpop.eup %2547 }
 0x3c9   : > { %v1082_v35 = vunpack.c.l.bf16 %v1080_v33  ;;  %v1083_v36 = vunpack.c.h.bf16 %v1080_v33 }
 0x3ca   : > { %v3139_v37 = vpop.eup %2549 }
 0x3cb   : > { %v1086_v38 = vsub.f32 %v3133_v32, %v1082_v35  ;;  %v1087_v39 = vsub.f32 %v3131_v31, %v1083_v36  ;;  %v1081_v40 = vpack.c.bf16 %v3137_v34, %v3139_v37 }
 0x3cd   : > { %2318 = vmatprep.mubr.f32.mxu1 %v1086_v38  ;;  %v1084_v41 = vunpack.c.l.bf16 %v1081_v40  ;;  %v1085_v42 = vunpack.c.h.bf16 %v1081_v40 }
 0x3ce   : > { %2319 = vmatmul.mubr.f32.vlgmr.msra.gmra.mxu1 %v1087_v39 }
 0x3cf   : > { %2325 = vmatpush3.msra.mxu1 %v3009_v51  ;;  %v1088_v43 = vsub.f32 %v3139_v37, %v1084_v41  ;;  %v1089_v44 = vsub.f32 %v3137_v34, %v1085_v42  ;;  %v1289_v51 = vld [vmem:[%s3483_s16 + $0x48] sm:$0xff] }
 0x3d0   : > { %2326 = vmatprep.subr.mxu1 %v3014_v52  ;;  %2374 = vmatprep.subr.mxu0 %v1289_v51 }
 0x3d1   : > { %2327 = vmatpush3.msra.mxu1 %v3014_v52  ;;  %2321 = vmatprep.mubr.f32.mxu1 %v1088_v43  ;;  %v1288_v52 = vld [vmem:[%s3483_s16 + $0x40] sm:$0xff] }
 0x3d2   : > { %2328 = vmatprep.subr.mxu1 %v3021_v53  ;;  %2322 = vmatmul.mubr.f32.gmra.mxu1 %v1089_v44  ;;  %v1482_v44 = vld [vmem:[%s3513_s23 + $0x10] sm:$0xff] }
 0x3d3   : > { %2329 = vmatpush3.msra.mxu1 %v3021_v53  ;;  %2356 = vmatprep.mubr.f32.mxu1 %v1082_v35  ;;  %v1287_v53 = vld [vmem:[%s3483_s16 + $0x38] sm:$0xff] }
 0x3d4   : > { %2330 = vmatprep.subr.mxu1 %v3042_v6  ;;  %2375 = vmatpush3.msra.mxu0 %v1289_v51 }
 0x3d5   : > { %2331 = vmatpush3.msra.mxu1 %v3042_v6  ;;  %2376 = vmatprep.subr.mxu0 %v1288_v52 }
 0x3d6   : > { %2332 = vmatprep.subr.mxu1 %v3049_v7  ;;  %2377 = vmatpush3.msra.mxu0 %v1288_v52 }
 0x3d7   : > { %2333 = vmatpush3.msra.mxu1 %v3049_v7  ;;  %2378 = vmatprep.subr.mxu0 %v1287_v53 }
 0x3d8   : > { %2334 = vmatprep.subr.mxu1 %v3056_v8  ;;  %2379 = vmatpush3.msra.mxu0 %v1287_v53 }
 0x3d9   : > { %2335 = vmatpush3.msra.mxu1 %v3056_v8  ;;  %2380 = vmatprep.subr.mxu0 %v1286_v54 }
 0x3da   : > { %2336 = vmatprep.subr.mxu1 %v3063_v9  ;;  %2381 = vmatpush3.msra.mxu0 %v1286_v54 }
 0x3db   : > { %2337 = vmatpush3.msra.mxu1 %v3063_v9  ;;  %2382 = vmatprep.subr.mxu0 %v1285_v55 }
 0x3dc   : > { %2338 = vmatprep.subr.mxu1 %v3070_v10  ;;  %2383 = vmatpush3.msra.mxu0 %v1285_v55 }
 0x3dd   : > { %2339 = vmatpush3.msra.mxu1 %v3070_v10  ;;  %2384 = vmatprep.subr.mxu0 %v1284_v56 }
 0x3de   : > { %2340 = vmatprep.subr.mxu1 %v3077_v11  ;;  %2385 = vmatpush3.msra.mxu0 %v1284_v56 }
 0x3df   : > { %2341 = vmatpush3.msra.mxu1 %v3077_v11  ;;  %2386 = vmatprep.subr.mxu0 %v1283_v57 }
 0x3e0   : > { %2342 = vmatprep.subr.mxu1 %v3082_v12  ;;  %2387 = vmatpush3.msra.mxu0 %v1283_v57 }
 0x3e1   : > { %2343 = vmatpush3.msra.mxu1 %v3082_v12  ;;  %2388 = vmatprep.subr.mxu0 %v1282_v58 }
 0x3e2   : > { %2344 = vmatprep.subr.mxu1 %v3089_v13  ;;  %2389 = vmatpush3.msra.mxu0 %v1282_v58 }
 0x3e3   : > { %2345 = vmatpush3.msra.mxu1 %v3089_v13  ;;  %2390 = vmatprep.subr.mxu0 %v1281_v59 }
 0x3e4   : > { %2346 = vmatprep.subr.mxu1 %v3096_v14  ;;  %2391 = vmatpush3.msra.mxu0 %v1281_v59 }
 0x3e5   : > { %2347 = vmatpush3.msra.mxu1 %v3096_v14  ;;  %2392 = vmatprep.subr.mxu0 %v1280_v60 }
 0x3e6   : > { %2348 = vmatprep.subr.mxu1 %v3103_v15  ;;  %2393 = vmatpush3.msra.mxu0 %v1280_v60 }
 0x3e7   : > { %2349 = vmatpush3.msra.mxu1 %v3103_v15 }
 0x3e8   : > { %2350 = vmatprep.subr.mxu1 %v3110_v16 }
 0x3e9   : > { %2351 = vmatpush3.msra.mxu1 %v3110_v16 }
 0x3ea   : > { %2352 = vmatprep.subr.mxu1 %v3117_v17 }
 0x3eb   : > { %2353 = vmatpush3.msra.mxu1 %v3117_v17 }
 0x3ec   : > { %2354 = vmatprep.subr.mxu1 %v3124_v18 }
 0x3ed   : > { %2355 = vmatpush3.msra.mxu1 %v3124_v18 }
 0x3ee   : > { %2357 = vmatmul.mubr.f32.vlgmr.msra.gmra.mxu1 %v1083_v36  ;;  %2400 = vmatprep.subr.mxu1 %v1295_v45 }
 0x3ef   : > { %2359 = vmatprep.mubr.f32.mxu1 %v1084_v41  ;;  %2401 = vmatpush3.msra.mxu1 %v1295_v45  ;;  %v1481_v45 = vld [vmem:[%s3513_s23 + $0x8] sm:$0xff] }
 0x3f0   : > { %2402 = vmatprep.subr.mxu1 %v1294_v46 }
 0x3f1   : > { %2403 = vmatpush3.msra.mxu1 %v1294_v46  ;;  %v1480_v46 = vld [vmem:[%s3513_s23] sm:$0xff] }
 0x3f2   : > { %2360 = vmatmul.mubr.f32.gmra.mxu1 %v1085_v42  ;;  %2404 = vmatprep.subr.mxu1 %v1293_v47 }
 0x3f3   : > { %2405 = vmatpush3.msra.mxu1 %v1293_v47 }
 0x3f4   : > { %2406 = vmatprep.subr.mxu1 %v1292_v48 }
 0x3f5   : > { %2407 = vmatpush3.msra.mxu1 %v1292_v48 }
 0x3f6   : > { %2408 = vmatprep.subr.mxu1 %v1291_v49 }
 0x3f7   : > { %2409 = vmatpush3.msra.mxu1 %v1291_v49 }
 0x3f8   : > { %2410 = vmatprep.subr.mxu1 %v1290_v50 }
 0x3f9   : > { %2411 = vmatpush3.msra.mxu1 %v1290_v50 }
 0x3fa   : > { %2412 = vmatprep.subr.mxu1 %v1289_v51 }
 0x3fb   : > { %2413 = vmatpush3.msra.mxu1 %v1289_v51 }
 0x3fc   : > { %2414 = vmatprep.subr.mxu1 %v1288_v52 }
 0x3fd   : > { %2415 = vmatpush3.msra.mxu1 %v1288_v52 }
 0x3fe   : > { %2416 = vmatprep.subr.mxu1 %v1287_v53 }
 0x3ff   : > { %2417 = vmatpush3.msra.mxu1 %v1287_v53 }
 0x400   : > { %2418 = vmatprep.subr.mxu1 %v1286_v54 }
 0x401   : > { %2419 = vmatpush3.msra.mxu1 %v1286_v54 }
 0x402   : > { %2420 = vmatprep.subr.mxu1 %v1285_v55 }
 0x403   : > { %2421 = vmatpush3.msra.mxu1 %v1285_v55 }
 0x404   : > { %2422 = vmatprep.subr.mxu1 %v1284_v56 }
 0x405   : > { %2423 = vmatpush3.msra.mxu1 %v1284_v56 }
 0x406   : > { %2424 = vmatprep.subr.mxu1 %v1283_v57 }
 0x407   : > { %2425 = vmatpush3.msra.mxu1 %v1283_v57 }
 0x408   : > { %2426 = vmatprep.subr.mxu1 %v1282_v58 }
 0x409   : > { %2427 = vmatpush3.msra.mxu1 %v1282_v58 }
 0x40a   : > { %2428 = vmatprep.subr.mxu1 %v1281_v59 }
 0x40b   : > { %2429 = vmatpush3.msra.mxu1 %v1281_v59 }
 0x40c   : > { %2430 = vmatprep.subr.mxu1 %v1280_v60 }
 0x40d   : > { %2431 = vmatpush3.msra.mxu1 %v1280_v60 }
 0x48e   : > { %v2320_v4 = vpop.f32.mrf.mxu1 }
 0x490   : > { %v1156_v6 = vpop.f32.mrf.mxu1 }
 0x492   : > { %v2323_v7 = vpop.f32.mrf.mxu1 }
 0x494   : > { %v1166_v8 = vpop.f32.mrf.mxu1 }
 0x4ae   : > { %v2358_v9 = vpop.f32.mrf.mxu1 }
 0x4af   : > { %v1247_v10 = vadd.f32 %v2358_v9, %v2320_v4 }
 0x4b0   : > { %v1241_v11 = vpop.f32.mrf.mxu1 }
 0x4b1   : > { %2551 = vrcp.f32 %v1247_v10  ;;  %v1242_v12 = vadd.f32 %v1241_v11, %v1156_v6 }
 0x4b2   : > { %v2361_v13 = vpop.f32.mrf.mxu1 }
 0x4b3   : > { %2553 = vrcp.f32 %v1242_v12  ;;  %v1257_v14 = vadd.f32 %v2361_v13, %v2323_v7 }
 0x4b4   : > { %v1251_v15 = vpop.f32.mrf.mxu1 }
 0x4b5   : > { %2555 = vrcp.f32 %v1257_v14  ;;  %v1252_v16 = vadd.f32 %v1251_v15, %v1166_v8 }
 0x4b7   : > { %2557 = vrcp.f32 %v1252_v16 }
 0x4be   : > { %v2552_v17 = vpop.eup %2551 }
 0x4bf   : > { %v1265_v18 = vmul.f32 %v2552_v17, %v3131_v31 }
 0x4c0   : > { %v2554_v19 = vpop.eup %2553 }
 0x4c1   : > { %v1264_v22 = vmul.f32 %v2554_v19, %v3133_v32  ;;  %1269 = vst [vmem:[%s3248_s20 + $0x8] sm:$0xff] %v1265_v18  ;;  %v1277_v25 = vmul.f32 %v1273_v21, %v1265_v18 }
 0x4c2   : > { %v2556_v23 = vpop.eup %2555 }
 0x4c3   : > { %1268 = vst [vmem:[%s3248_s20] sm:$0xff] %v1264_v22  ;;  %v1276_v24 = vmul.f32 %v1272_v20, %v1264_v22  ;;  %v1267_v26 = vmul.f32 %v2556_v23, %v3137_v34 }
 0x4c4   : > { %v2558_v27 = vpop.eup %2557 }
 0x4c5   : > { %v1296_v30 = vpack.c.bf16 %v1277_v25, %v1276_v24  ;;  %v1266_v31 = vmul.f32 %v2558_v27, %v3139_v37  ;;  %1271 = vst [vmem:[%s3248_s20 + $0x18] sm:$0xff] %v1267_v26  ;;  %v1279_v36 = vmul.f32 %v1275_v29, %v1267_v26  ;;  %v1483_v37 = vld [vmem:[%s3513_s23 + $0x18] sm:$0xff] }
 0x4c6   : > { %2438 = vmatprep.subr.mxu1 %v1483_v37 }
 0x4c7   : > { %v1298_v32 = vunpack.c.l.bf16 %v1296_v30  ;;  %v1299_v33 = vunpack.c.h.bf16 %v1296_v30  ;;  %1270 = vst [vmem:[%s3248_s20 + $0x10] sm:$0xff] %v1266_v31  ;;  %v1278_v35 = vmul.f32 %v1274_v28, %v1266_v31 }
 0x4c9   : > { %v1303_v38 = vsub.f32 %v1277_v25, %v1299_v33  ;;  %2432 = vmatprep.mubr.f32.mxu1 %v1298_v32  ;;  %v1302_v34 = vsub.f32 %v1276_v24, %v1298_v32  ;;  %v1297_v39 = vpack.c.bf16 %v1279_v36, %v1278_v35 }
 0x4ca   : > { %2433 = vmatmul.mubr.f32.vlgmr.msra.gmra.mxu1 %v1299_v33 }
 0x4cb   : > { %2394 = vmatprep.mubr.f32.mxu0 %v1302_v34  ;;  %v1300_v40 = vunpack.c.l.bf16 %v1297_v39  ;;  %v1301_v41 = vunpack.c.h.bf16 %v1297_v39  ;;  %2439 = vmatpush3.msra.mxu1 %v1483_v37  ;;  %v1672_v34 = vld [vmem:[%s3475_s8 + $0x10] sm:$0xff]  ;;  %v1671_v39 = vld [vmem:[%s3475_s8 + $0x8] sm:$0xff]  ;;  %v1786_v37 = vld [vmem:[%s3477_s10 + $0x20] sm:$0xff] }
 0x4cc   : > { %2395 = vmatmul.mubr.f32.vlgmr.msra.gmra.mxu0 %v1303_v38  ;;  %2440 = vmatprep.subr.mxu1 %v1482_v44  ;;  %v1673_v38 = vld [vmem:[%s3475_s8 + $0x18] sm:$0xff] }
 0x4cd   : > { %2435 = vmatprep.mubr.f32.mxu1 %v1300_v40  ;;  %v1304_v42 = vsub.f32 %v1278_v35, %v1300_v40  ;;  %v1305_v43 = vsub.f32 %v1279_v36, %v1301_v41  ;;  %2441 = vmatpush3.msra.mxu1 %v1482_v44  ;;  %v1670_v40 = vld [vmem:[%s3475_s8] sm:$0xff] }
 0x4ce   : > { %2436 = vmatmul.mubr.f32.gmra.mxu1 %v1301_v41  ;;  %2442 = vmatprep.subr.mxu1 %v1481_v45  ;;  %v1789_v41 = vld [vmem:[%s3477_s10 + $0x38] sm:$0xff] }
 0x4cf   : > { %2397 = vmatprep.mubr.f32.mxu0 %v1304_v42  ;;  %2443 = vmatpush3.msra.mxu1 %v1481_v45  ;;  %v1788_v42 = vld [vmem:[%s3477_s10 + $0x30] sm:$0xff] }
 0x4d0   : > { %2398 = vmatmul.mubr.f32.gmra.mxu0 %v1305_v43  ;;  %2444 = vmatprep.subr.mxu1 %v1480_v46  ;;  %v1787_v43 = vld [vmem:[%s3477_s10 + $0x28] sm:$0xff] }
 0x4d1   : > { %2445 = vmatpush3.msra.mxu1 %v1480_v46  ;;  %2466 = vmatprep.subr.mxu0 %v1789_v41 }
 0x4d2   : > { %2452 = vmatprep.subr.mxu1 %v1673_v38  ;;  %2467 = vmatpush3.msra.mxu0 %v1789_v41 }
 0x4d3   : > { %2468 = vmatprep.subr.mxu0 %v1788_v42 }
 0x4d4   : > { %2469 = vmatpush3.msra.mxu0 %v1788_v42 }
 0x4d5   : > { %2470 = vmatprep.subr.mxu0 %v1787_v43 }
 0x4d6   : > { %2471 = vmatpush3.msra.mxu0 %v1787_v43 }
 0x4d7   : > { %2472 = vmatprep.subr.mxu0 %v1786_v37 }
 0x4d8   : > { %2473 = vmatpush3.msra.mxu0 %v1786_v37 }
 0x58a   : > { %v2434_v47 = vpop.f32.mrf.mxu1 }
 0x58c   : > { %v2396_v48 = vpop.f32.mrf.mxu0  ;;  %v1457_v49 = vpop.f32.mrf.mxu1 }
 0x58d   : > { %v1463_v50 = vadd.f32 %v2434_v47, %v2396_v48 }
 0x58e   : > { %v1372_v51 = vpop.f32.mrf.mxu0  ;;  %v2437_v52 = vpop.f32.mrf.mxu1 }
 0x58f   : > { %v1458_v53 = vadd.f32 %v1457_v49, %v1372_v51  ;;  %v1477_v56 = vmul.f32 %v3226_v61, %v1463_v50  ;;  %v2074_v61 = vld [vmem:[%s3514_s3] ss:$0 sm:$0xff]  ;;  %s2571_s3 = sshll.u32 %s2660_s29, 4  ;;  %s2572_s3 = int_to_ptr.vmem [resolvable:$false] %s2571_s3 }
 0x590   : > { %v2399_v54 = vpop.f32.mrf.mxu0  ;;  %v1467_v58 = vpop.f32.mrf.mxu1  ;;  %s2573_s20 = scalar_lea.vmem %s2572_s3, 1024  ;;  %p2574_p0 = scmp.lt.s32.totalorder %s3376_s19, %s2572_s3 }
 0x591   : > { %v1476_v55 = vmul.f32 %v1458_v53, %v3228_v62  ;;  %v1473_v57 = vadd.f32 %v2437_v52, %v2399_v54  ;;  %p2575_p1 = scmp.lt.s32.totalorder %s2573_s20, %s2567_s25 }
 0x592   : > { %v1382_v59 = vpop.f32.mrf.mxu0 }
 0x593   : > { %v1468_v60 = vadd.f32 %v1467_v58, %v1382_v59  ;;  %2446 = vmatprep.mubr.msk.f32.mxu1 %vm591_vm0, %v1476_v55  ;;  %v1479_v6 = vmul.f32 %v3230_v63, %v1473_v57  ;;  %v2075_v58 = vld [vmem:[%s3473_s6] ss:$0 sm:$0xff]  ;;  %p2576_p2 = por %p2575_p1, %p2574_p0 }
 0x594   : > { %2447 = vmatmul.mubr.msk.f32.vlgmr.msra.gmra.mxu1 %vm591_vm0, %v1477_v56 }
 0x595   : > { %v1478_v4 = vmul.f32 %v1468_v60, %v3232_v3  ;;  %2453 = vmatpush3.msra.mxu1 %v1673_v38  ;;  %p2577_p3 = pnand %p2576_p2, %p2570_p13 }
 0x596   : > { %2454 = vmatprep.subr.mxu1 %v1672_v34 }
 0x597   : > { %2449 = vmatprep.mubr.msk.f32.mxu1 %vm591_vm0, %v1478_v4  ;;  %2455 = vmatpush3.msra.mxu1 %v1672_v34 }
 0x598   : > { %2450 = vmatmul.mubr.msk.f32.gmra.mxu1 %vm591_vm0, %v1479_v6  ;;  %2456 = vmatprep.subr.mxu1 %v1671_v39 }
 0x599   : > { %2457 = vmatpush3.msra.mxu1 %v1671_v39 }
 0x59a   : > { %2458 = vmatprep.subr.mxu1 %v1670_v40 }
 0x59b   : > { %2459 = vmatpush3.msra.mxu1 %v1670_v40 }
 0x654   : > { %v2448_v7 = vpop.f32.mrf.mxu1 }
 0x655   : > { %v1582_v62 = vadd.f32 %v2448_v7, %v2816_v2  ;;  %v2076_v7 = vld [vmem:[%s3474_s7] ss:$0 sm:$0xff] }
 0x656   : > { %v1562_v8 = vpop.f32.mrf.mxu1 }
 0x657   : > { %v3286_v9 = vadd.f32 %v2074_v61, %v1582_v62  ;;  %v1581_v10 = vadd.f32 %v1562_v8, %v2812_v0 }
 0x658   : > { %v2451_v11 = vpop.f32.mrf.mxu1 }
 0x659   : > { %v3289_v3 = vadd.f32 %v2074_v61, %v1581_v10  ;;  %v1584_v63 = vadd.f32 %v2451_v11, %v2822_v5  ;;  %v1601_v12 = vsel %vm591_vm0, %v3286_v9, 0.0 }
 0x65a   : > { %1602 = vadd.xlane.f32.xlu1 %v1601_v12  ;;  %v1572_v13 = vpop.f32.mrf.mxu1 }
 0x65b   : > { %v3294_v14 = vadd.f32 %v2074_v61, %v1584_v63  ;;  %v1583_v15 = vadd.f32 %v1572_v13, %v2814_v1  ;;  %v1598_v2 = vsel %vm591_vm0, %v3289_v3, 0.0 }
 0x65c   : > { %1599 = vadd.xlane.f32.xlu0 %v1598_v2 }
 0x65d   : > { %v3299_v16 = vadd.f32 %v2074_v61, %v1583_v15  ;;  %v1607_v0 = vsel %vm591_vm0, %v3294_v14, 0.0 }
 0x65e   : > { %1608 = vadd.xlane.f32.xlu1 %v1607_v0  ;;  %v1785_v0 = vld [vmem:[%s3477_s10 + $0x18] sm:$0xff] }
 0x65f   : > { %v1604_v5 = vsel %vm591_vm0, %v3299_v16, 0.0  ;;  %2474 = vmatprep.subr.mxu0 %v1785_v0 }
 0x660   : > { %1605 = vadd.xlane.f32.xlu0 %v1604_v5  ;;  %2475 = vmatpush3.msra.mxu0 %v1785_v0  ;;  %v1784_v5 = vld [vmem:[%s3477_s10 + $0x10] sm:$0xff] }
 0x661   : > { %2476 = vmatprep.subr.mxu0 %v1784_v5 }
 0x662   : > { %2477 = vmatpush3.msra.mxu0 %v1784_v5 }
 0x6e3   : > { %v1603_v17 = vpop.xlane.xlu1 %1602 }
 0x6e4   : > { %v1611_v18 = vmul.f32 0.03125, %v1603_v17  ;;  %v1783_v17 = vld [vmem:[%s3477_s10 + $0x8] sm:$0xff] }
 0x6e5   : > { %v1600_v19 = vpop.xlane.xlu0 %1599  ;;  %2478 = vmatprep.subr.mxu0 %v1783_v17 }
 0x6e6   : > { %v1615_v20 = vsub.f32 %v3286_v9, %v1611_v18  ;;  %v1610_v1 = vmul.f32 0.03125, %v1600_v19  ;;  %2479 = vmatpush3.msra.mxu0 %v1783_v17  ;;  %v1782_v18 = vld [vmem:[%s3477_s10] sm:$0xff] }
 0x6e7   : > { %v1609_v21 = vpop.xlane.xlu1 %1608  ;;  %2480 = vmatprep.subr.mxu0 %v1782_v18  ;;  %v2077_v19 = vld [vmem:[%s3476_s9] ss:$0 sm:$0xff] }
 0x6e8   : > { %v1614_v22 = vsub.f32 %v3289_v3, %v1610_v1  ;;  %v1613_v23 = vmul.f32 0.03125, %v1609_v21  ;;  %v1619_v24 = vmul.f32 %v1615_v20, %v1615_v20  ;;  %2481 = vmatpush3.msra.mxu0 %v1782_v18 }
 0x6e9   : > { %v1606_v25 = vpop.xlane.xlu0 %1605 }
 0x6ea   : > { %v3308_v26 = vsub.f32 %v3294_v14, %v1613_v23  ;;  %v1612_v27 = vmul.f32 0.03125, %v1606_v25  ;;  %v1625_v28 = vsel %vm591_vm0, %v1619_v24, 0.0  ;;  %v1618_v29 = vmul.f32 %v1614_v22, %v1614_v22 }
 0x6eb   : > { %1626 = vadd.xlane.f32.xlu1 %v1625_v28 }
 0x6ec   : > { %v1616_v30 = vsub.f32 %v3299_v16, %v1612_v27  ;;  %v1622_v31 = vsel %vm591_vm0, %v1618_v29, 0.0  ;;  %v1621_v32 = vmul.f32 %v3308_v26, %v3308_v26 }
 0x6ed   : > { %1623 = vadd.xlane.f32.xlu0 %v1622_v31 }
 0x6ee   : > { %v1631_v33 = vsel %vm591_vm0, %v1621_v32, 0.0  ;;  %v1620_v35 = vmul.f32 %v1616_v30, %v1616_v30 }
 0x6ef   : > { %1632 = vadd.xlane.f32.xlu1 %v1631_v33 }
 0x6f0   : > { %v1628_v36 = vsel %vm591_vm0, %v1620_v35, 0.0 }
 0x6f1   : > { %1629 = vadd.xlane.f32.xlu0 %v1628_v36 }
 0x774   : > { %v1627_v44 = vpop.xlane.xlu1 %1626 }
 0x775   : > { %v1635_v45 = vmul.f32 0.03125, %v1627_v44 }
 0x776   : > { %v1624_v46 = vpop.xlane.xlu0 %1623 }
 0x777   : > { %v1639_v47 = vadd.f32 1e-05, %v1635_v45  ;;  %v1634_v48 = vmul.f32 0.03125, %v1624_v46 }
 0x778   : > { %v1633_v49 = vpop.xlane.xlu1 %1632 }
 0x779   : > { %2559 = vrsqrt.f32 %v1639_v47  ;;  %v1638_v50 = vadd.f32 1e-05, %v1634_v48  ;;  %v1637_v51 = vmul.f32 0.03125, %v1633_v49 }
 0x77a   : > { %v1630_v52 = vpop.xlane.xlu0 %1629 }
 0x77b   : > { %2561 = vrsqrt.f32 %v1638_v50  ;;  %v1641_v53 = vadd.f32 1e-05, %v1637_v51  ;;  %v1636_v54 = vmul.f32 0.03125, %v1630_v52 }
 0x77d   : > { %2563 = vrsqrt.f32 %v1641_v53  ;;  %v1640_v55 = vadd.f32 1e-05, %v1636_v54 }
 0x77f   : > { %2565 = vrsqrt.f32 %v1640_v55 }
 0x786   : > { %v2560_v56 = vpop.eup %2559 }
 0x787   : > { %v1647_v57 = vmul.f32 %v2560_v56, %v1615_v20 }
 0x788   : > { %v2562_v59 = vpop.eup %2561 }
 0x789   : > { %v1646_v60 = vmul.f32 %v2562_v59, %v1614_v22  ;;  %v1657_v6 = vmul.f32 %v2075_v58, %v1647_v57 }
 0x78a   : > { %v2564_v4 = vpop.eup %2563 }
 0x78b   : > { %v1656_v61 = vmul.f32 %v2075_v58, %v1646_v60  ;;  %v1649_v62 = vmul.f32 %v2564_v4, %v3308_v26  ;;  %v1667_v63 = vadd.f32 %v2076_v7, %v1657_v6 }
 0x78c   : > { %v2566_v8 = vpop.eup %2565 }
 0x78d   : > { %v1666_v10 = vadd.f32 %v2076_v7, %v1656_v61  ;;  %v1648_v11 = vmul.f32 %v2566_v8, %v1616_v30  ;;  %v1659_v12 = vmul.f32 %v2075_v58, %v1649_v62 }
 0x78f   : > { %2460 = vmatprep.mubr.msk.f32.mxu1 %vm591_vm0, %v1666_v10  ;;  %v1658_v13 = vmul.f32 %v2075_v58, %v1648_v11  ;;  %v1669_v2 = vadd.f32 %v2076_v7, %v1659_v12 }
 0x790   : > { %2461 = vmatmul.mubr.msk.f32.vlgmr.msra.gmra.mxu1 %vm591_vm0, %v1667_v63 }
 0x791   : > { %v1668_v15 = vadd.f32 %v2076_v7, %v1658_v13 }
 0x793   : > { %2463 = vmatprep.mubr.msk.f32.mxu1 %vm591_vm0, %v1668_v15 }
 0x794   : > { %2464 = vmatmul.mubr.msk.f32.gmra.mxu1 %vm591_vm0, %v1669_v2 }
 0x850   : > { %v2462_v20 = vpop.f32.mrf.mxu1 }
 0x851   : > { %v1765_v1 = vadd.f32 %v2462_v20, %v2077_v19 }
 0x852   : > { %v1759_v21 = vpop.f32.mrf.mxu1 }
 0x853   : > { %v1760_v22 = vadd.f32 %v2077_v19, %v1759_v21  ;;  %v1779_v25 = vmax.f32 %v1765_v1, 0.0 }
 0x854   : > { %v2465_v23 = vpop.f32.mrf.mxu1 }
 0x855   : > { %v1778_v24 = vmax.f32 %v1760_v22, 0.0  ;;  %v1775_v26 = vadd.f32 %v2465_v23, %v2077_v19 }
 0x856   : > { %v1769_v27 = vpop.f32.mrf.mxu1 }
 0x857   : > { %v1770_v28 = vadd.f32 %v2077_v19, %v1769_v27  ;;  %2482 = vmatprep.mubr.msk.f32.mxu0 %vm1797_vm1, %v1778_v24  ;;  %v1781_v30 = vmax.f32 %v1775_v26, 0.0 }
 0x858   : > { %2483 = vmatmul.mubr.msk.f32.vlgmr.msra.gmra.mxu0 %vm1797_vm1, %v1779_v25 }
 0x859   : > { %v1780_v29 = vmax.f32 %v1770_v28, 0.0 }
 0x85b   : > { %2485 = vmatprep.mubr.msk.f32.mxu0 %vm1797_vm1, %v1780_v29 }
 0x85c   : > { %2486 = vmatmul.mubr.msk.f32.gmra.mxu0 %vm1797_vm1, %v1781_v30 }
 0x85d   : > { %2580 = shalt.err (!%p2577_p3)
}
 0x85e   : > { %s2581_s1 = scalar_lea.hbm %s3374_s21, 512  ;;  %s2585_s29 = scalar_lea.hbm %s3485_s18, 1024 }
 0x85f   : > { %p2582_p4 = scmp.ne.s32.totalorder %s3374_s21, %s2581_s1  ;;  %p2586_p9 = scmp.lt.s32.totalorder %s3374_s21, %s3485_s18 }
 0x860   : > { %p2587_p10 = scmp.lt.s32.totalorder %s2585_s29, %s2581_s1 }
 0x861   : > { %p2583_p7 = pnand %p2582_p4, %p2797_p5 }
 0x862   : > { %p2588_p11 = por %p2587_p10, %p2586_p9 }
 0x863   : > { %p2584_p8 = pneg %p2583_p7 }
 0x865   : > { %p2589_p12 = pnand %p2588_p11, %p2584_p8 }
 0x867   : > { %2592 = shalt.err (!%p2589_p12)
}
 0x868   : > { %s3495_s3 = smov 128   ;;  %s2662_s25 = smov 8   ;;  %v2082_v31 = vld [vmem:[%s3478_s11] ss:$0 sm:$0xff] }
 0x869   : > { %s3515_s4 = scalar_lea.sflag [#allocation5], %s3235_s22  ;;  %s3516_s24 = sshll.u32 %s3235_s22, 5 }
 0x86a   : > { %2489 = dma.vmem_to_hbm [thread:$0]  (%p2797_p5), %s3376_s19, 512, %s3374_s21, %s3515_s4, %s3495_s3, %s3495_s3, %s2662_s25  }
 0x86b   : > { %s572_s1 = scalar_lea.vmem [#allocation2], %s3516_s24  ;;  %s3517_s21 = sshll.u32 %s2780_s0, 9 }
 0x86c   : > { %s1922_s19 = sshll.u32 %s572_s1, 4  ;;  %s3421_s4 = scalar_lea.hbm %s3484_s17, %s3517_s21  ;;  %s3423_s19 = int_to_ptr.vmem [resolvable:$true] %s1922_s19 }
 0x86d   : > { %s1904_s20 = scalar_lea.sflag [#allocation3], %s3235_s22  ;;  %s2593_s5 = scalar_lea.vmem %s3423_s19, 512 }
 0x86e   : > { %p2594_p13 = scmp.ne.s32.totalorder %s3423_s19, %s2593_s5  ;;  %s2663_s24 = smov [#allocation2]  }
 0x86f   : > { %s2597_s0 = sshll.u32 %s2663_s24, 4  ;;  %s2598_s0 = int_to_ptr.vmem [resolvable:$false] %s2597_s0 }
 0x870   : > { %p2595_p0 = pnand %p2594_p13, %p2797_p5  ;;  %s2599_s3 = scalar_lea.vmem %s2598_s0, 1024 }
 0x871   : > { %p2600_p2 = scmp.lt.s32.totalorder %s3423_s19, %s2598_s0  ;;  %p2601_p3 = scmp.lt.s32.totalorder %s2599_s3, %s2593_s5 }
 0x872   : > { %p2596_p1 = pneg %p2595_p0 }
 0x873   : > { %p2602_p4 = por %p2601_p3, %p2600_p2 }
 0x875   : > { %p2603_p7 = pnand %p2602_p4, %p2596_p1 }
 0x918   : > { %v2484_v32 = vpop.f32.mrf.mxu0 }
 0x919   : > { %v1882_v33 = vadd.f32 %v2484_v32, %v2082_v31 }
 0x91a   : > { %v1876_v35 = vpop.f32.mrf.mxu0 }
 0x91b   : > { %v1896_v36 = vadd.f32 %v1882_v33, %v3286_v9  ;;  %v1877_v38 = vadd.f32 %v2082_v31, %v1876_v35 }
 0x91c   : > { %v2487_v34 = vpop.f32.mrf.mxu0 }
 0x91d   : > { %1900 = vst.msk [vmem:[%s572_s1 + $0x8] sm:$0xff] %vm591_vm0, %v1896_v36  ;;  %v1895_v39 = vadd.f32 %v1877_v38, %v3289_v3  ;;  %v1892_v40 = vadd.f32 %v2487_v34, %v2082_v31 }
 0x91e   : > { %v1886_v41 = vpop.f32.mrf.mxu0 }
 0x91f   : > { %1899 = vst.msk [vmem:[%s572_s1] sm:$0xff] %vm591_vm0, %v1895_v39  ;;  %v1898_v42 = vadd.f32 %v1892_v40, %v3294_v14  ;;  %v1887_v43 = vadd.f32 %v2082_v31, %v1886_v41 }
 0x921   : > { %1902 = vst.msk [vmem:[%s572_s1 + $0x18] sm:$0xff] %vm591_vm0, %v1898_v42  ;;  %v1897_v9 = vadd.f32 %v1887_v43, %v3299_v16 }
 0x923   : > { %1901 = vst.msk [vmem:[%s572_s1 + $0x10] sm:$0xff] %vm591_vm0, %v1897_v9 }
 0x924   : > { %2606 = shalt.err (!%p2603_p7)
}
 0x925   : > { %s2607_s1 = scalar_lea.hbm %s3421_s4, 512  ;;  %s2611_s27 = scalar_lea.hbm %s3484_s17, 1024 }
 0x926   : > { %p2608_p8 = scmp.ne.s32.totalorder %s3421_s4, %s2607_s1  ;;  %p2612_p11 = scmp.lt.s32.totalorder %s3421_s4, %s3484_s17 }
 0x927   : > { %p2613_p12 = scmp.lt.s32.totalorder %s2611_s27, %s2607_s1 }
 0x928   : > { %p2609_p9 = pnand %p2608_p8, %p2797_p5 }
 0x929   : > { %p2614_p13 = por %p2613_p12, %p2612_p11 }
 0x92a   : > { %p2610_p10 = pneg %p2609_p9 }
 0x92c   : > { %p2615_p0 = pnand %p2614_p13, %p2610_p10 }
 0x92e   : > { %2618 = shalt.err (!%p2615_p0)
}
 0x92f   : > { %s3518_s3 = smov 128  }
 0x930   : > { %2488 = dma.vmem_to_hbm [thread:$0]  (%p2797_p5), %s3423_s19, 512, %s3421_s4, %s1904_s20, %s3518_s3, %s3518_s3, %s2662_s25  }
 0x931 PF: > { %s3519_s5 = sld [smem:[#allocation8_spill]]  ;;  %p2499_p1 = scmp.ge.s32.totalorder %s2657_s30, 2 }
 0x933   : > { %p2493_p2 = pnand %p2499_p1, %p2801_p6 }
 0x935   : > { %p2494_p3 = pneg %p2493_p2 }
 0x937   : > { %s1953_s22 = sand.u32 1, %s3519_s5  }
 0x938   : > { %s1954_s1 = scalar_lea.sflag [#allocation3], %s1953_s22 }
 0x939   : > { %2636 = dma.done.wait (%p2494_p3), %s1954_s1, 512  }
 0x93a   : > { %2638 = vsyncadd (%p2494_p3), %s1954_s1, 4294966784  ;;  %s1963_s21 = scalar_lea.sflag [#allocation5], %s1953_s22 }
 0x93b   : > { %2640 = dma.done.wait (%p2494_p3), %s1963_s21, 512  }
 0x93c   : > { %2642 = vsyncadd (%p2494_p3), %s1963_s21, 4294966784  ;;  %s3521_s30 = sld [smem:[#allocation10_spill]]  ;;  %s3524_s27 = smov %s2649_s28 }
 0x93d   : > { %s3522_s2 = sld [smem:[#allocation9_spill]] }
 0x93e   : > { %s3523_s29 = sld [smem:[#allocation11_spill]] }
 0x942   : > { %p32_p5 = scmp.ge.s32.totalorder %s3521_s30, 4  }
 0x943   : > { %s3525_s28 = smov %s3522_s2 }
 0x944   :  { %34 = sbr.rel (!%p32_p5) target bundleno = 12 (0xc), region = 140 }
 0x949   :  { %1968 = vsyncpa [#allocation3], 1 }
 0x94a   :  { %1970 = vsyncpa [#allocation3 + $0x1], 1 }
 0x94b   :  { %1971 = vsyncpa [#allocation5], 1 }
 0x94c   :  { %1973 = vsyncpa [#allocation5 + $0x1], 1 }

</bundles_post_ra>
